<compile_context>
chip_gen: v7x
topology: tpu7x:2x2x1
jax: 0.10.0
libtpu: 0.0.40
codegen_flags: <defaults>
</compile_context>

<pallas_src>
import jax
import jax.numpy as jnp
from jax.experimental import pallas as pl
from jax.experimental.pallas import tpu as pltpu

# ----------------------------- hyper-params ---------------------------------
WORD_DIM = 32
ATTENTION_DIM = 16
ATTENTION_HEADS = 4
MULTI_DIM = ATTENTION_DIM * ATTENTION_HEADS          # 64
HEAD_DIM = MULTI_DIM // ATTENTION_HEADS              # 16
QUERY_VECTOR_DIM = 32
ENTITY_SIZE = 8                                      # entities per news
ENTITY_EMBEDDING_DIM = 64
CATEGORY_DIM = 16
SUBCATEGORY_DIM = 16
CATEGORY_SIZE = 10
SUBCATEGORY_SIZE = 12
BATCH = 2
SEQ = 8                                              # words per title
LN_EPS = 1e-5


# --------------------------- in-kernel helpers -------------------------------
def _layer_norm(x, g, b):
    mu = jnp.mean(x, axis=-1, keepdims=True)
    var = jnp.mean(jnp.square(x - mu), axis=-1, keepdims=True)
    return (x - mu) * jax.lax.rsqrt(var + LN_EPS) * g + b


def _additive_attention(x3, w, b, q):
    """x3: [B, N, D]; softmax over N; returns tanh(weighted sum): [B, D]."""
    bsz, n, d = x3.shape
    proj = jnp.dot(x3.reshape(bsz * n, d), w,
                   preferred_element_type=jnp.float32) + b            # [B*N, Q]
    proj3 = jnp.tanh(proj).reshape(bsz, n, -1)                        # [B, N, Q]
    scores = jnp.sum(proj3 * q, axis=-1, keepdims=True)               # [B, N, 1]
    scores = scores - jnp.max(scores, axis=1, keepdims=True)
    e = jnp.exp(scores)
    attn = e * pl.reciprocal(jnp.sum(e, axis=1, keepdims=True), approx=True)
    rep = jnp.sum(attn * x3, axis=1)                                  # [B, D]
    return jnp.tanh(rep)           # forward wraps the attention output in tanh


# ------------------------------ fused kernel ---------------------------------
def _news_encoder_kernel(
    # inputs
    cat_ref, sub_ref, word_ref, ent_ref,
    fc1w_ref, fc1b_ref, fc2w_ref, fc2b_ref,
    wq_ref, wk_ref, wv_ref,
    lng_ref, lnb_ref,
    waw_ref, wab_ref, waq_ref,
    fc3w_ref, fc3b_ref,
    gcna_ref, gcnw_ref, gcnb_ref,
    eaw_ref, eab_ref, eaq_ref,
    naw_ref, nab_ref, naq_ref,
    # outputs
    news_o_ref, cat_o_ref, sub_o_ref, word_o_ref, ent_o_ref,
    # scratch
    mh_ref,
):
    ln_g = lng_ref[...]
    ln_b = lnb_ref[...]

    # -- category / subcategory paths: tanh(fc(emb)) (dropout = identity) -----
    cat_rep = jnp.tanh(
        jnp.dot(cat_ref[...], fc1w_ref[...], preferred_element_type=jnp.float32)
        + fc1b_ref[...])
    sub_rep = jnp.tanh(
        jnp.dot(sub_ref[...], fc2w_ref[...], preferred_element_type=jnp.float32)
        + fc2b_ref[...])

    # -- word path: MHSA -> LayerNorm -> additive attention -> tanh -----------
    word = word_ref[...]                                   # [B, S, Dw]
    bsz, s, dw = word.shape
    wf = word.reshape(bsz * s, dw)
    q = jnp.dot(wf, wq_ref[...], preferred_element_type=jnp.float32).reshape(bsz, s, MULTI_DIM)
    k = jnp.dot(wf, wk_ref[...], preferred_element_type=jnp.float32).reshape(bsz, s, MULTI_DIM)
    v = jnp.dot(wf, wv_ref[...], preferred_element_type=jnp.float32).reshape(bsz, s, MULTI_DIM)
    # TODO(synk): 1/sqrt(d_h) scaling assumed; drop `scale` if the original
    # MultiHeadSelfAttention_2 is unscaled.
    scale = 1.0 / (HEAD_DIM ** 0.5)
    for h in range(ATTENTION_HEADS):                       # static, unrolled
        lo, hi = h * HEAD_DIM, (h + 1) * HEAD_DIM
        qh = q[:, :, lo:hi]
        kh = k[:, :, lo:hi]
        vh = v[:, :, lo:hi]
        sc = jnp.einsum('bqd,bkd->bqk', qh, kh,
                        preferred_element_type=jnp.float32) * scale   # [B, S, S]
        sc = sc - jnp.max(sc, axis=-1, keepdims=True)
        e = jnp.exp(sc)
        p = e * pl.reciprocal(jnp.sum(e, axis=-1, keepdims=True), approx=True)
        # write each head directly into its lane slice of the VMEM scratch
        mh_ref[:, :, lo:hi] = jnp.einsum('bqk,bkd->bqd', p, vh,
                                         preferred_element_type=jnp.float32)
    mh = _layer_norm(mh_ref[...], ln_g, ln_b)              # [B, S, M]
    word_rep = _additive_attention(mh, waw_ref[...], wab_ref[...], waq_ref[...])

    # -- entity path: tanh(fc3) -> GCN -> LayerNorm -> additive attn -> tanh --
    ent = ent_ref[...]                                     # [B, E, De]
    _, e_sz, de = ent.shape
    ent3 = jnp.tanh(
        jnp.dot(ent.reshape(bsz * e_sz, de), fc3w_ref[...],
                preferred_element_type=jnp.float32) + fc3b_ref[...]
    ).reshape(bsz, e_sz, de)
    adj = gcna_ref[...]
    agg = jnp.concatenate(
        [jnp.dot(adj, ent3[i], preferred_element_type=jnp.float32)
         for i in range(bsz)], axis=0)                     # [B*E, De]
    gcn_out = jnp.dot(agg, gcnw_ref[...],
                      preferred_element_type=jnp.float32) + gcnb_ref[...]
    ent_inter = _layer_norm(gcn_out, ln_g, ln_b).reshape(bsz, e_sz, MULTI_DIM)
    entity_rep = _additive_attention(ent_inter, eaw_ref[...], eab_ref[...], eaq_ref[...])

    # -- news-level additive attention over the 4 representations -------------
    naw = naw_ref[...]
    nab = nab_ref[...]
    naq = naq_ref[...]
    reps = (word_rep, entity_rep, cat_rep, sub_rep)        # same order as torch.cat
    scores = [jnp.sum(jnp.tanh(jnp.dot(r, naw, preferred_element_type=jnp.float32) + nab) * naq,
                      axis=-1, keepdims=True)
              for r in reps]                               # 4 x [B, 1]
    m = jnp.maximum(jnp.maximum(scores[0], scores[1]),
                    jnp.maximum(scores[2], scores[3]))
    es = [jnp.exp(sv - m) for sv in scores]
    inv = pl.reciprocal(es[0] + es[1] + es[2] + es[3], approx=True)
    news_rep = jnp.tanh((es[0] * inv) * reps[0] + (es[1] * inv) * reps[1]
                        + (es[2] * inv) * reps[2] + (es[3] * inv) * reps[3])

    # -- only the five final lane-dense [B, 64] outputs hit HBM ----------------
    news_o_ref[...] = news_rep
    cat_o_ref[...] = cat_rep
    sub_o_ref[...] = sub_rep
    word_o_ref[...] = word_rep
    ent_o_ref[...] = entity_rep


# ------------------------------ wrapper --------------------------------------
def news_encoder_forward(params, word_embedding, entity_embedding,
                         category_index, subcategory_index):
    # nn.Embedding lookups (tiny gathers) done outside the kernel.
    cat_emb = jnp.take(params["emb1_w"], category_index.astype(jnp.int32), axis=0)
    sub_emb = jnp.take(params["emb2_w"], subcategory_index.astype(jnp.int32), axis=0)

    bsz, s, _ = word_embedding.shape
    f32 = jnp.float32
    r2 = lambda x: x.reshape(1, -1)

    out_shape = tuple(jax.ShapeDtypeStruct((bsz, MULTI_DIM), f32) for _ in range(5))
    outs = pl.pallas_call(
        _news_encoder_kernel,
        out_shape=out_shape,
        scratch_shapes=[pltpu.VMEM((bsz, s, MULTI_DIM), f32)],   # MHSA output
    )(
        cat_emb, sub_emb, word_embedding, entity_embedding,
        params["fc1_w"], r2(params["fc1_b"]),
        params["fc2_w"], r2(params["fc2_b"]),
        params["mha_wq"], params["mha_wk"], params["mha_wv"],
        r2(params["ln_g"]), r2(params["ln_b"]),
        params["wattn_w"], r2(params["wattn_b"]), r2(params["wattn_q"]),
        params["fc3_w"], r2(params["fc3_b"]),
        params["gcn_A"], params["gcn_w"], r2(params["gcn_b"]),
        params["eattn_w"], r2(params["eattn_b"]), r2(params["eattn_q"]),
        params["nattn_w"], r2(params["nattn_b"]), r2(params["nattn_q"]),
    )
    news_rep, category_rep, subcategory_rep, word_rep, entity_rep = outs
    return news_rep, category_rep, subcategory_rep, word_rep, entity_rep


# ------------------------------ parameters -----------------------------------
def init_params(key):
    ks = jax.random.split(key, 24)
    w = lambda k, shape, sc=0.05: (sc * jax.random.normal(k, shape)).astype(jnp.float32)
    p = {
        "emb1_w": w(ks[0], (CATEGORY_SIZE, CATEGORY_DIM), 0.1),
        "emb2_w": w(ks[1], (SUBCATEGORY_SIZE, SUBCATEGORY_DIM), 0.1),
        "fc1_w": w(ks[2], (CATEGORY_DIM, MULTI_DIM)),
        "fc1_b": w(ks[3], (MULTI_DIM,)),
        "fc2_w": w(ks[4], (SUBCATEGORY_DIM, MULTI_DIM)),
        "fc2_b": w(ks[5], (MULTI_DIM,)),
        "mha_wq": w(ks[6], (WORD_DIM, MULTI_DIM)),
        "mha_wk": w(ks[7], (WORD_DIM, MULTI_DIM)),
        "mha_wv": w(ks[8], (WORD_DIM, MULTI_DIM)),
        "ln_g": (1.0 + 0.01 * jax.random.normal(ks[9], (MULTI_DIM,))).astype(jnp.float32),
        "ln_b": w(ks[10], (MULTI_DIM,), 0.01),
        "wattn_w": w(ks[11], (MULTI_DIM, QUERY_VECTOR_DIM)),
        "wattn_b": w(ks[12], (QUERY_VECTOR_DIM,)),
        "wattn_q": w(ks[13], (QUERY_VECTOR_DIM,), 0.1),
        "fc3_w": w(ks[14], (ENTITY_EMBEDDING_DIM, ENTITY_EMBEDDING_DIM)),
        "fc3_b": w(ks[15], (ENTITY_EMBEDDING_DIM,)),
        "gcn_A": w(ks[16], (ENTITY_SIZE, ENTITY_SIZE), 0.2),
        "gcn_w": w(ks[17], (ENTITY_EMBEDDING_DIM, MULTI_DIM)),
        "gcn_b": w(ks[18], (MULTI_DIM,)),
        "eattn_w": w(ks[19], (MULTI_DIM, QUERY_VECTOR_DIM)),
        "eattn_b": w(ks[20], (QUERY_VECTOR_DIM,)),
        "eattn_q": w(ks[21], (QUERY_VECTOR_DIM,), 0.1),
        "nattn_w": w(ks[22], (MULTI_DIM, QUERY_VECTOR_DIM)),
        "nattn_b": w(ks[23], (QUERY_VECTOR_DIM,)),
        "nattn_q": w(jax.random.fold_in(key, 99), (QUERY_VECTOR_DIM,), 0.1),
    }
    return p


# ------------------------------ main ------------------------------------------
if __name__ == "__main__":
    key = jax.random.PRNGKey(0)
    kp, kw, ke, kc, ks = jax.random.split(key, 5)

    params = init_params(kp)
    word_embedding = jax.random.normal(kw, (BATCH, SEQ, WORD_DIM), dtype=jnp.float32)
    entity_embedding = jax.random.normal(ke, (BATCH, ENTITY_SIZE, ENTITY_EMBEDDING_DIM),
                                         dtype=jnp.float32)
    category_index = jax.random.randint(kc, (BATCH,), 0, CATEGORY_SIZE, dtype=jnp.int32)
    subcategory_index = jax.random.randint(ks, (BATCH,), 0, SUBCATEGORY_SIZE, dtype=jnp.int32)

    outs = jax.jit(news_encoder_forward)(params, word_embedding, entity_embedding,
                                         category_index, subcategory_index)
    outs = jax.block_until_ready(outs)

    news_rep, category_rep, subcategory_rep, word_rep, entity_rep = outs
    assert news_rep.shape == (BATCH, MULTI_DIM)
    assert category_rep.shape == (BATCH, MULTI_DIM)
    assert subcategory_rep.shape == (BATCH, MULTI_DIM)
    assert word_rep.shape == (BATCH, MULTI_DIM)
    assert entity_rep.shape == (BATCH, MULTI_DIM)
    assert all(bool(jnp.all(jnp.isfinite(o))) for o in outs)
    print("KERNEL_OK")
</pallas_src>

<mosaic_0001>
module attributes {stable_mosaic.version = 11 : i64} {
  func.func @_news_encoder_kernel(%arg0: memref<2x16xf32, #tpu.memory_space<vmem>>, %arg1: memref<2x16xf32, #tpu.memory_space<vmem>>, %arg2: memref<2x8x32xf32, #tpu.memory_space<vmem>>, %arg3: memref<2x8x64xf32, #tpu.memory_space<vmem>>, %arg4: memref<16x64xf32, #tpu.memory_space<vmem>>, %arg5: memref<1x64xf32, #tpu.memory_space<vmem>>, %arg6: memref<16x64xf32, #tpu.memory_space<vmem>>, %arg7: memref<1x64xf32, #tpu.memory_space<vmem>>, %arg8: memref<32x64xf32, #tpu.memory_space<vmem>>, %arg9: memref<32x64xf32, #tpu.memory_space<vmem>>, %arg10: memref<32x64xf32, #tpu.memory_space<vmem>>, %arg11: memref<1x64xf32, #tpu.memory_space<vmem>>, %arg12: memref<1x64xf32, #tpu.memory_space<vmem>>, %arg13: memref<64x32xf32, #tpu.memory_space<vmem>>, %arg14: memref<1x32xf32, #tpu.memory_space<vmem>>, %arg15: memref<1x32xf32, #tpu.memory_space<vmem>>, %arg16: memref<64x64xf32, #tpu.memory_space<vmem>>, %arg17: memref<1x64xf32, #tpu.memory_space<vmem>>, %arg18: memref<8x8xf32, #tpu.memory_space<vmem>>, %arg19: memref<64x64xf32, #tpu.memory_space<vmem>>, %arg20: memref<1x64xf32, #tpu.memory_space<vmem>>, %arg21: memref<64x32xf32, #tpu.memory_space<vmem>>, %arg22: memref<1x32xf32, #tpu.memory_space<vmem>>, %arg23: memref<1x32xf32, #tpu.memory_space<vmem>>, %arg24: memref<64x32xf32, #tpu.memory_space<vmem>>, %arg25: memref<1x32xf32, #tpu.memory_space<vmem>>, %arg26: memref<1x32xf32, #tpu.memory_space<vmem>>, %arg27: memref<2x64xf32, #tpu.memory_space<vmem>>, %arg28: memref<2x64xf32, #tpu.memory_space<vmem>>, %arg29: memref<2x64xf32, #tpu.memory_space<vmem>>, %arg30: memref<2x64xf32, #tpu.memory_space<vmem>>, %arg31: memref<2x64xf32, #tpu.memory_space<vmem>>, %arg32: memref<2x8x64xf32, #tpu.memory_space<vmem>>) attributes {dimension_semantics = [], scalar_prefetch = 0 : i64, scratch_operands = 1 : i64, tpu.core_type = #tpu.core_type<tc>} {
    %c0 = arith.constant 0 : index
    %c0_0 = arith.constant 0 : index
    %0 = vector.load %arg11[%c0, %c0_0] : memref<1x64xf32, #tpu.memory_space<vmem>>, vector<1x64xf32>
    %c0_1 = arith.constant 0 : index
    %c0_2 = arith.constant 0 : index
    %1 = vector.load %arg12[%c0_1, %c0_2] : memref<1x64xf32, #tpu.memory_space<vmem>>, vector<1x64xf32>
    %c0_3 = arith.constant 0 : index
    %c0_4 = arith.constant 0 : index
    %2 = vector.load %arg0[%c0_3, %c0_4] : memref<2x16xf32, #tpu.memory_space<vmem>>, vector<2x16xf32>
    %c0_5 = arith.constant 0 : index
    %c0_6 = arith.constant 0 : index
    %3 = vector.load %arg4[%c0_5, %c0_6] : memref<16x64xf32, #tpu.memory_space<vmem>>, vector<16x64xf32>
    %cst = arith.constant dense<0.000000e+00> : vector<2x64xf32>
    %4 = tpu.matmul %2, %3, %cst {dimension_numbers = #tpu.dot_dimension_numbers<[1], [0], [0], [1], [0, 0, 1, 1], [], []>} : vector<2x16xf32>, vector<16x64xf32>, vector<2x64xf32> -> vector<2x64xf32>
    %c0_7 = arith.constant 0 : index
    %c0_8 = arith.constant 0 : index
    %5 = vector.load %arg5[%c0_7, %c0_8] : memref<1x64xf32, #tpu.memory_space<vmem>>, vector<1x64xf32>
    %6 = vector.broadcast %5 : vector<1x64xf32> to vector<2x64xf32>
    %7 = arith.addf %4, %6 : vector<2x64xf32>
    %8 = math.tanh %7 : vector<2x64xf32>
    %c0_9 = arith.constant 0 : index
    %c0_10 = arith.constant 0 : index
    %9 = vector.load %arg1[%c0_9, %c0_10] : memref<2x16xf32, #tpu.memory_space<vmem>>, vector<2x16xf32>
    %c0_11 = arith.constant 0 : index
    %c0_12 = arith.constant 0 : index
    %10 = vector.load %arg6[%c0_11, %c0_12] : memref<16x64xf32, #tpu.memory_space<vmem>>, vector<16x64xf32>
    %cst_13 = arith.constant dense<0.000000e+00> : vector<2x64xf32>
    %11 = tpu.matmul %9, %10, %cst_13 {dimension_numbers = #tpu.dot_dimension_numbers<[1], [0], [0], [1], [0, 0, 1, 1], [], []>} : vector<2x16xf32>, vector<16x64xf32>, vector<2x64xf32> -> vector<2x64xf32>
    %c0_14 = arith.constant 0 : index
    %c0_15 = arith.constant 0 : index
    %12 = vector.load %arg7[%c0_14, %c0_15] : memref<1x64xf32, #tpu.memory_space<vmem>>, vector<1x64xf32>
    %13 = vector.broadcast %12 : vector<1x64xf32> to vector<2x64xf32>
    %14 = arith.addf %11, %13 : vector<2x64xf32>
    %15 = math.tanh %14 : vector<2x64xf32>
    %c0_16 = arith.constant 0 : index
    %c0_17 = arith.constant 0 : index
    %c0_18 = arith.constant 0 : index
    %16 = vector.load %arg2[%c0_16, %c0_17, %c0_18] : memref<2x8x32xf32, #tpu.memory_space<vmem>>, vector<2x8x32xf32>
    %17 = vector.shape_cast %16 : vector<2x8x32xf32> to vector<16x32xf32>
    %c0_19 = arith.constant 0 : index
    %c0_20 = arith.constant 0 : index
    %18 = vector.load %arg8[%c0_19, %c0_20] : memref<32x64xf32, #tpu.memory_space<vmem>>, vector<32x64xf32>
    %cst_21 = arith.constant dense<0.000000e+00> : vector<16x64xf32>
    %19 = tpu.matmul %17, %18, %cst_21 {dimension_numbers = #tpu.dot_dimension_numbers<[1], [0], [0], [1], [0, 0, 1, 1], [], []>} : vector<16x32xf32>, vector<32x64xf32>, vector<16x64xf32> -> vector<16x64xf32>
    %20 = vector.shape_cast %19 : vector<16x64xf32> to vector<2x8x64xf32>
    %c0_22 = arith.constant 0 : index
    %c0_23 = arith.constant 0 : index
    %21 = vector.load %arg9[%c0_22, %c0_23] : memref<32x64xf32, #tpu.memory_space<vmem>>, vector<32x64xf32>
    %cst_24 = arith.constant dense<0.000000e+00> : vector<16x64xf32>
    %22 = tpu.matmul %17, %21, %cst_24 {dimension_numbers = #tpu.dot_dimension_numbers<[1], [0], [0], [1], [0, 0, 1, 1], [], []>} : vector<16x32xf32>, vector<32x64xf32>, vector<16x64xf32> -> vector<16x64xf32>
    %23 = vector.shape_cast %22 : vector<16x64xf32> to vector<2x8x64xf32>
    %c0_25 = arith.constant 0 : index
    %c0_26 = arith.constant 0 : index
    %24 = vector.load %arg10[%c0_25, %c0_26] : memref<32x64xf32, #tpu.memory_space<vmem>>, vector<32x64xf32>
    %cst_27 = arith.constant dense<0.000000e+00> : vector<16x64xf32>
    %25 = tpu.matmul %17, %24, %cst_27 {dimension_numbers = #tpu.dot_dimension_numbers<[1], [0], [0], [1], [0, 0, 1, 1], [], []>} : vector<16x32xf32>, vector<32x64xf32>, vector<16x64xf32> -> vector<16x64xf32>
    %26 = vector.shape_cast %25 : vector<16x64xf32> to vector<2x8x64xf32>
    %27 = vector.extract_strided_slice %20 {offsets = [0, 0, 0], sizes = [2, 8, 16], strides = [1, 1, 1]} : vector<2x8x64xf32> to vector<2x8x16xf32>
    %28 = vector.extract_strided_slice %23 {offsets = [0, 0, 0], sizes = [2, 8, 16], strides = [1, 1, 1]} : vector<2x8x64xf32> to vector<2x8x16xf32>
    %29 = vector.extract_strided_slice %26 {offsets = [0, 0, 0], sizes = [2, 8, 16], strides = [1, 1, 1]} : vector<2x8x64xf32> to vector<2x8x16xf32>
    "tpu.trace_start"() <{level = 10 : i32, message = "bqd,bkd->bqk"}> : () -> ()
    %cst_28 = arith.constant dense<0.000000e+00> : vector<2x8x8xf32>
    %30 = tpu.matmul %27, %28, %cst_28 {dimension_numbers = #tpu.dot_dimension_numbers<[2], [2], [1], [1], [0, 0, 0, 1, 1, 1], [0], [0]>} : vector<2x8x16xf32>, vector<2x8x16xf32>, vector<2x8x8xf32> -> vector<2x8x8xf32>
    "tpu.trace_stop"() : () -> ()
    %cst_29 = arith.constant 2.500000e-01 : f32
    %31 = vector.broadcast %cst_29 : f32 to vector<2x8x8xf32>
    %32 = arith.mulf %30, %31 : vector<2x8x8xf32>
    %cst_30 = arith.constant dense<0xFF800000> : vector<2x8xf32>
    %33 = vector.multi_reduction <maximumf>, %32, %cst_30 [2] : vector<2x8x8xf32> to vector<2x8xf32>
    %34 = vector.shape_cast %33 : vector<2x8xf32> to vector<2x8x1xf32>
    %35 = vector.broadcast %34 : vector<2x8x1xf32> to vector<2x8x8xf32>
    %36 = arith.subf %32, %35 : vector<2x8x8xf32>
    %37 = math.exp %36 : vector<2x8x8xf32>
    %cst_31 = arith.constant dense<0.000000e+00> : vector<2x8xf32>
    %38 = vector.multi_reduction <add>, %37, %cst_31 [2] : vector<2x8x8xf32> to vector<2x8xf32>
    %39 = vector.shape_cast %38 : vector<2x8xf32> to vector<2x8x1xf32>
    %40 = tpu.reciprocal %39 {approx = true} : vector<2x8x1xf32> -> vector<2x8x1xf32>
    %41 = vector.broadcast %40 : vector<2x8x1xf32> to vector<2x8x8xf32>
    %42 = arith.mulf %37, %41 : vector<2x8x8xf32>
    "tpu.trace_start"() <{level = 10 : i32, message = "bqk,bkd->bqd"}> : () -> ()
    %cst_32 = arith.constant dense<0.000000e+00> : vector<2x8x16xf32>
    %43 = tpu.matmul %42, %29, %cst_32 {dimension_numbers = #tpu.dot_dimension_numbers<[2], [1], [1], [2], [0, 0, 0, 1, 1, 2], [0], [0]>} : vector<2x8x8xf32>, vector<2x8x16xf32>, vector<2x8x16xf32> -> vector<2x8x16xf32>
    "tpu.trace_stop"() : () -> ()
    %c0_33 = arith.constant 0 : index
    %c0_34 = arith.constant 0 : index
    %c0_35 = arith.constant 0 : index
    %44 = vector.load %arg32[%c0_33, %c0_34, %c0_35] : memref<2x8x64xf32, #tpu.memory_space<vmem>>, vector<2x8x16xf32>
    tpu.vector_store %arg32[%c0_33, %c0_34, %c0_35], %43 {strides = array<i32>} : memref<2x8x64xf32, #tpu.memory_space<vmem>>, vector<2x8x16xf32>,
    %45 = vector.extract_strided_slice %20 {offsets = [0, 0, 16], sizes = [2, 8, 16], strides = [1, 1, 1]} : vector<2x8x64xf32> to vector<2x8x16xf32>
    %46 = vector.extract_strided_slice %23 {offsets = [0, 0, 16], sizes = [2, 8, 16], strides = [1, 1, 1]} : vector<2x8x64xf32> to vector<2x8x16xf32>
    %47 = vector.extract_strided_slice %26 {offsets = [0, 0, 16], sizes = [2, 8, 16], strides = [1, 1, 1]} : vector<2x8x64xf32> to vector<2x8x16xf32>
    "tpu.trace_start"() <{level = 10 : i32, message = "bqd,bkd->bqk"}> : () -> ()
    %cst_36 = arith.constant dense<0.000000e+00> : vector<2x8x8xf32>
    %48 = tpu.matmul %45, %46, %cst_36 {dimension_numbers = #tpu.dot_dimension_numbers<[2], [2], [1], [1], [0, 0, 0, 1, 1, 1], [0], [0]>} : vector<2x8x16xf32>, vector<2x8x16xf32>, vector<2x8x8xf32> -> vector<2x8x8xf32>
    "tpu.trace_stop"() : () -> ()
    %cst_37 = arith.constant 2.500000e-01 : f32
    %49 = vector.broadcast %cst_37 : f32 to vector<2x8x8xf32>
    %50 = arith.mulf %48, %49 : vector<2x8x8xf32>
    %cst_38 = arith.constant dense<0xFF800000> : vector<2x8xf32>
    %51 = vector.multi_reduction <maximumf>, %50, %cst_38 [2] : vector<2x8x8xf32> to vector<2x8xf32>
    %52 = vector.shape_cast %51 : vector<2x8xf32> to vector<2x8x1xf32>
    %53 = vector.broadcast %52 : vector<2x8x1xf32> to vector<2x8x8xf32>
    %54 = arith.subf %50, %53 : vector<2x8x8xf32>
    %55 = math.exp %54 : vector<2x8x8xf32>
    %cst_39 = arith.constant dense<0.000000e+00> : vector<2x8xf32>
    %56 = vector.multi_reduction <add>, %55, %cst_39 [2] : vector<2x8x8xf32> to vector<2x8xf32>
    %57 = vector.shape_cast %56 : vector<2x8xf32> to vector<2x8x1xf32>
    %58 = tpu.reciprocal %57 {approx = true} : vector<2x8x1xf32> -> vector<2x8x1xf32>
    %59 = vector.broadcast %58 : vector<2x8x1xf32> to vector<2x8x8xf32>
    %60 = arith.mulf %55, %59 : vector<2x8x8xf32>
    "tpu.trace_start"() <{level = 10 : i32, message = "bqk,bkd->bqd"}> : () -> ()
    %cst_40 = arith.constant dense<0.000000e+00> : vector<2x8x16xf32>
    %61 = tpu.matmul %60, %47, %cst_40 {dimension_numbers = #tpu.dot_dimension_numbers<[2], [1], [1], [2], [0, 0, 0, 1, 1, 2], [0], [0]>} : vector<2x8x8xf32>, vector<2x8x16xf32>, vector<2x8x16xf32> -> vector<2x8x16xf32>
    "tpu.trace_stop"() : () -> ()
    %c0_41 = arith.constant 0 : index
    %c0_42 = arith.constant 0 : index
    %c16 = arith.constant 16 : index
    %62 = vector.load %arg32[%c0_41, %c0_42, %c16] : memref<2x8x64xf32, #tpu.memory_space<vmem>>, vector<2x8x16xf32>
    tpu.vector_store %arg32[%c0_41, %c0_42, %c16], %61 {strides = array<i32>} : memref<2x8x64xf32, #tpu.memory_space<vmem>>, vector<2x8x16xf32>,
    %63 = vector.extract_strided_slice %20 {offsets = [0, 0, 32], sizes = [2, 8, 16], strides = [1, 1, 1]} : vector<2x8x64xf32> to vector<2x8x16xf32>
    %64 = vector.extract_strided_slice %23 {offsets = [0, 0, 32], sizes = [2, 8, 16], strides = [1, 1, 1]} : vector<2x8x64xf32> to vector<2x8x16xf32>
    %65 = vector.extract_strided_slice %26 {offsets = [0, 0, 32], sizes = [2, 8, 16], strides = [1, 1, 1]} : vector<2x8x64xf32> to vector<2x8x16xf32>
    "tpu.trace_start"() <{level = 10 : i32, message = "bqd,bkd->bqk"}> : () -> ()
    %cst_43 = arith.constant dense<0.000000e+00> : vector<2x8x8xf32>
    %66 = tpu.matmul %63, %64, %cst_43 {dimension_numbers = #tpu.dot_dimension_numbers<[2], [2], [1], [1], [0, 0, 0, 1, 1, 1], [0], [0]>} : vector<2x8x16xf32>, vector<2x8x16xf32>, vector<2x8x8xf32> -> vector<2x8x8xf32>
    "tpu.trace_stop"() : () -> ()
    %cst_44 = arith.constant 2.500000e-01 : f32
    %67 = vector.broadcast %cst_44 : f32 to vector<2x8x8xf32>
    %68 = arith.mulf %66, %67 : vector<2x8x8xf32>
    %cst_45 = arith.constant dense<0xFF800000> : vector<2x8xf32>
    %69 = vector.multi_reduction <maximumf>, %68, %cst_45 [2] : vector<2x8x8xf32> to vector<2x8xf32>
    %70 = vector.shape_cast %69 : vector<2x8xf32> to vector<2x8x1xf32>
    %71 = vector.broadcast %70 : vector<2x8x1xf32> to vector<2x8x8xf32>
    %72 = arith.subf %68, %71 : vector<2x8x8xf32>
    %73 = math.exp %72 : vector<2x8x8xf32>
    %cst_46 = arith.constant dense<0.000000e+00> : vector<2x8xf32>
    %74 = vector.multi_reduction <add>, %73, %cst_46 [2] : vector<2x8x8xf32> to vector<2x8xf32>
    %75 = vector.shape_cast %74 : vector<2x8xf32> to vector<2x8x1xf32>
    %76 = tpu.reciprocal %75 {approx = true} : vector<2x8x1xf32> -> vector<2x8x1xf32>
    %77 = vector.broadcast %76 : vector<2x8x1xf32> to vector<2x8x8xf32>
    %78 = arith.mulf %73, %77 : vector<2x8x8xf32>
    "tpu.trace_start"() <{level = 10 : i32, message = "bqk,bkd->bqd"}> : () -> ()
    %cst_47 = arith.constant dense<0.000000e+00> : vector<2x8x16xf32>
    %79 = tpu.matmul %78, %65, %cst_47 {dimension_numbers = #tpu.dot_dimension_numbers<[2], [1], [1], [2], [0, 0, 0, 1, 1, 2], [0], [0]>} : vector<2x8x8xf32>, vector<2x8x16xf32>, vector<2x8x16xf32> -> vector<2x8x16xf32>
    "tpu.trace_stop"() : () -> ()
    %c0_48 = arith.constant 0 : index
    %c0_49 = arith.constant 0 : index
    %c32 = arith.constant 32 : index
    %80 = vector.load %arg32[%c0_48, %c0_49, %c32] : memref<2x8x64xf32, #tpu.memory_space<vmem>>, vector<2x8x16xf32>
    tpu.vector_store %arg32[%c0_48, %c0_49, %c32], %79 {strides = array<i32>} : memref<2x8x64xf32, #tpu.memory_space<vmem>>, vector<2x8x16xf32>,
    %81 = vector.extract_strided_slice %20 {offsets = [0, 0, 48], sizes = [2, 8, 16], strides = [1, 1, 1]} : vector<2x8x64xf32> to vector<2x8x16xf32>
    %82 = vector.extract_strided_slice %23 {offsets = [0, 0, 48], sizes = [2, 8, 16], strides = [1, 1, 1]} : vector<2x8x64xf32> to vector<2x8x16xf32>
    %83 = vector.extract_strided_slice %26 {offsets = [0, 0, 48], sizes = [2, 8, 16], strides = [1, 1, 1]} : vector<2x8x64xf32> to vector<2x8x16xf32>
    "tpu.trace_start"() <{level = 10 : i32, message = "bqd,bkd->bqk"}> : () -> ()
    %cst_50 = arith.constant dense<0.000000e+00> : vector<2x8x8xf32>
    %84 = tpu.matmul %81, %82, %cst_50 {dimension_numbers = #tpu.dot_dimension_numbers<[2], [2], [1], [1], [0, 0, 0, 1, 1, 1], [0], [0]>} : vector<2x8x16xf32>, vector<2x8x16xf32>, vector<2x8x8xf32> -> vector<2x8x8xf32>
    "tpu.trace_stop"() : () -> ()
    %cst_51 = arith.constant 2.500000e-01 : f32
    %85 = vector.broadcast %cst_51 : f32 to vector<2x8x8xf32>
    %86 = arith.mulf %84, %85 : vector<2x8x8xf32>
    %cst_52 = arith.constant dense<0xFF800000> : vector<2x8xf32>
    %87 = vector.multi_reduction <maximumf>, %86, %cst_52 [2] : vector<2x8x8xf32> to vector<2x8xf32>
    %88 = vector.shape_cast %87 : vector<2x8xf32> to vector<2x8x1xf32>
    %89 = vector.broadcast %88 : vector<2x8x1xf32> to vector<2x8x8xf32>
    %90 = arith.subf %86, %89 : vector<2x8x8xf32>
    %91 = math.exp %90 : vector<2x8x8xf32>
    %cst_53 = arith.constant dense<0.000000e+00> : vector<2x8xf32>
    %92 = vector.multi_reduction <add>, %91, %cst_53 [2] : vector<2x8x8xf32> to vector<2x8xf32>
    %93 = vector.shape_cast %92 : vector<2x8xf32> to vector<2x8x1xf32>
    %94 = tpu.reciprocal %93 {approx = true} : vector<2x8x1xf32> -> vector<2x8x1xf32>
    %95 = vector.broadcast %94 : vector<2x8x1xf32> to vector<2x8x8xf32>
    %96 = arith.mulf %91, %95 : vector<2x8x8xf32>
    "tpu.trace_start"() <{level = 10 : i32, message = "bqk,bkd->bqd"}> : () -> ()
    %cst_54 = arith.constant dense<0.000000e+00> : vector<2x8x16xf32>
    %97 = tpu.matmul %96, %83, %cst_54 {dimension_numbers = #tpu.dot_dimension_numbers<[2], [1], [1], [2], [0, 0, 0, 1, 1, 2], [0], [0]>} : vector<2x8x8xf32>, vector<2x8x16xf32>, vector<2x8x16xf32> -> vector<2x8x16xf32>
    "tpu.trace_stop"() : () -> ()
    %c0_55 = arith.constant 0 : index
    %c0_56 = arith.constant 0 : index
    %c48 = arith.constant 48 : index
    %98 = vector.load %arg32[%c0_55, %c0_56, %c48] : memref<2x8x64xf32, #tpu.memory_space<vmem>>, vector<2x8x16xf32>
    tpu.vector_store %arg32[%c0_55, %c0_56, %c48], %97 {strides = array<i32>} : memref<2x8x64xf32, #tpu.memory_space<vmem>>, vector<2x8x16xf32>,
    %c0_57 = arith.constant 0 : index
    %c0_58 = arith.constant 0 : index
    %c0_59 = arith.constant 0 : index
    %99 = vector.load %arg32[%c0_57, %c0_58, %c0_59] : memref<2x8x64xf32, #tpu.memory_space<vmem>>, vector<2x8x64xf32>
    %cst_60 = arith.constant dense<0.000000e+00> : vector<2x8xf32>
    %100 = vector.multi_reduction <add>, %99, %cst_60 [2] : vector<2x8x64xf32> to vector<2x8xf32>
    %101 = vector.shape_cast %100 : vector<2x8xf32> to vector<2x8x1xf32>
    %cst_61 = arith.constant 6.400000e+01 : f32
    %102 = vector.broadcast %cst_61 : f32 to vector<2x8x1xf32>
    %103 = arith.divf %101, %102 : vector<2x8x1xf32>
    %104 = vector.broadcast %103 : vector<2x8x1xf32> to vector<2x8x64xf32>
    %105 = arith.subf %99, %104 : vector<2x8x64xf32>
    %106 = arith.mulf %105, %105 : vector<2x8x64xf32>
    %cst_62 = arith.constant dense<0.000000e+00> : vector<2x8xf32>
    %107 = vector.multi_reduction <add>, %106, %cst_62 [2] : vector<2x8x64xf32> to vector<2x8xf32>
    %108 = vector.shape_cast %107 : vector<2x8xf32> to vector<2x8x1xf32>
    %cst_63 = arith.constant 6.400000e+01 : f32
    %109 = vector.broadcast %cst_63 : f32 to vector<2x8x1xf32>
    %110 = arith.divf %108, %109 : vector<2x8x1xf32>
    %111 = vector.broadcast %103 : vector<2x8x1xf32> to vector<2x8x64xf32>
    %112 = arith.subf %99, %111 : vector<2x8x64xf32>
    %cst_64 = arith.constant 9.99999974E-6 : f32
    %113 = vector.broadcast %cst_64 : f32 to vector<2x8x1xf32>
    %114 = arith.addf %110, %113 : vector<2x8x1xf32>
    %115 = math.rsqrt %114 : vector<2x8x1xf32>
    %116 = vector.broadcast %115 : vector<2x8x1xf32> to vector<2x8x64xf32>
    %117 = arith.mulf %112, %116 : vector<2x8x64xf32>
    %118 = vector.shape_cast %0 : vector<1x64xf32> to vector<1x1x64xf32>
    %119 = vector.broadcast %118 : vector<1x1x64xf32> to vector<2x8x64xf32>
    %120 = arith.mulf %117, %119 : vector<2x8x64xf32>
    %121 = vector.shape_cast %1 : vector<1x64xf32> to vector<1x1x64xf32>
    %122 = vector.broadcast %121 : vector<1x1x64xf32> to vector<2x8x64xf32>
    %123 = arith.addf %120, %122 : vector<2x8x64xf32>
    %c0_65 = arith.constant 0 : index
    %c0_66 = arith.constant 0 : index
    %124 = vector.load %arg13[%c0_65, %c0_66] : memref<64x32xf32, #tpu.memory_space<vmem>>, vector<64x32xf32>
    %c0_67 = arith.constant 0 : index
    %c0_68 = arith.constant 0 : index
    %125 = vector.load %arg14[%c0_67, %c0_68] : memref<1x32xf32, #tpu.memory_space<vmem>>, vector<1x32xf32>
    %c0_69 = arith.constant 0 : index
    %c0_70 = arith.constant 0 : index
    %126 = vector.load %arg15[%c0_69, %c0_70] : memref<1x32xf32, #tpu.memory_space<vmem>>, vector<1x32xf32>
    %127 = vector.shape_cast %123 : vector<2x8x64xf32> to vector<16x64xf32>
    %cst_71 = arith.constant dense<0.000000e+00> : vector<16x32xf32>
    %128 = tpu.matmul %127, %124, %cst_71 {dimension_numbers = #tpu.dot_dimension_numbers<[1], [0], [0], [1], [0, 0, 1, 1], [], []>} : vector<16x64xf32>, vector<64x32xf32>, vector<16x32xf32> -> vector<16x32xf32>
    %129 = vector.broadcast %125 : vector<1x32xf32> to vector<16x32xf32>
    %130 = arith.addf %128, %129 : vector<16x32xf32>
    %131 = math.tanh %130 : vector<16x32xf32>
    %132 = vector.shape_cast %131 : vector<16x32xf32> to vector<2x8x32xf32>
    %133 = vector.shape_cast %126 : vector<1x32xf32> to vector<1x1x32xf32>
    %134 = vector.broadcast %133 : vector<1x1x32xf32> to vector<2x8x32xf32>
    %135 = arith.mulf %132, %134 : vector<2x8x32xf32>
    %cst_72 = arith.constant dense<0.000000e+00> : vector<2x8xf32>
    %136 = vector.multi_reduction <add>, %135, %cst_72 [2] : vector<2x8x32xf32> to vector<2x8xf32>
    %137 = vector.shape_cast %136 : vector<2x8xf32> to vector<2x8x1xf32>
    %cst_73 = arith.constant dense<0xFF800000> : vector<2x1xf32>
    %138 = vector.multi_reduction <maximumf>, %137, %cst_73 [1] : vector<2x8x1xf32> to vector<2x1xf32>
    %139 = vector.shape_cast %138 : vector<2x1xf32> to vector<2x1x1xf32>
    %140 = vector.broadcast %139 : vector<2x1x1xf32> to vector<2x8x1xf32>
    %141 = arith.subf %137, %140 : vector<2x8x1xf32>
    %142 = math.exp %141 : vector<2x8x1xf32>
    %cst_74 = arith.constant dense<0.000000e+00> : vector<2x1xf32>
    %143 = vector.multi_reduction <add>, %142, %cst_74 [1] : vector<2x8x1xf32> to vector<2x1xf32>
    %144 = vector.shape_cast %143 : vector<2x1xf32> to vector<2x1x1xf32>
    %145 = tpu.reciprocal %144 {approx = true} : vector<2x1x1xf32> -> vector<2x1x1xf32>
    %146 = vector.broadcast %145 : vector<2x1x1xf32> to vector<2x8x1xf32>
    %147 = arith.mulf %142, %146 : vector<2x8x1xf32>
    %148 = vector.broadcast %147 : vector<2x8x1xf32> to vector<2x8x64xf32>
    %149 = arith.mulf %148, %123 : vector<2x8x64xf32>
    %cst_75 = arith.constant dense<0.000000e+00> : vector<2x64xf32>
    %150 = vector.multi_reduction <add>, %149, %cst_75 [1] : vector<2x8x64xf32> to vector<2x64xf32>
    %151 = math.tanh %150 : vector<2x64xf32>
    %c0_76 = arith.constant 0 : index
    %c0_77 = arith.constant 0 : index
    %c0_78 = arith.constant 0 : index
    %152 = vector.load %arg3[%c0_76, %c0_77, %c0_78] : memref<2x8x64xf32, #tpu.memory_space<vmem>>, vector<2x8x64xf32>
    %153 = vector.shape_cast %152 : vector<2x8x64xf32> to vector<16x64xf32>
    %c0_79 = arith.constant 0 : index
    %c0_80 = arith.constant 0 : index
    %154 = vector.load %arg16[%c0_79, %c0_80] : memref<64x64xf32, #tpu.memory_space<vmem>>, vector<64x64xf32>
    %cst_81 = arith.constant dense<0.000000e+00> : vector<16x64xf32>
    %155 = tpu.matmul %153, %154, %cst_81 {dimension_numbers = #tpu.dot_dimension_numbers<[1], [0], [0], [1], [0, 0, 1, 1], [], []>} : vector<16x64xf32>, vector<64x64xf32>, vector<16x64xf32> -> vector<16x64xf32>
    %c0_82 = arith.constant 0 : index
    %c0_83 = arith.constant 0 : index
    %156 = vector.load %arg17[%c0_82, %c0_83] : memref<1x64xf32, #tpu.memory_space<vmem>>, vector<1x64xf32>
    %157 = vector.broadcast %156 : vector<1x64xf32> to vector<16x64xf32>
    %158 = arith.addf %155, %157 : vector<16x64xf32>
    %159 = math.tanh %158 : vector<16x64xf32>
    %160 = vector.shape_cast %159 : vector<16x64xf32> to vector<2x8x64xf32>
    %c0_84 = arith.constant 0 : index
    %c0_85 = arith.constant 0 : index
    %161 = vector.load %arg18[%c0_84, %c0_85] : memref<8x8xf32, #tpu.memory_space<vmem>>, vector<8x8xf32>
    %162 = vector.extract_strided_slice %160 {offsets = [0, 0, 0], sizes = [1, 8, 64], strides = [1, 1, 1]} : vector<2x8x64xf32> to vector<1x8x64xf32>
    %163 = vector.shape_cast %162 : vector<1x8x64xf32> to vector<8x64xf32>
    %cst_86 = arith.constant dense<0.000000e+00> : vector<8x64xf32>
    %164 = tpu.matmul %161, %163, %cst_86 {dimension_numbers = #tpu.dot_dimension_numbers<[1], [0], [0], [1], [0, 0, 1, 1], [], []>} : vector<8x8xf32>, vector<8x64xf32>, vector<8x64xf32> -> vector<8x64xf32>
    %165 = vector.extract_strided_slice %160 {offsets = [1, 0, 0], sizes = [1, 8, 64], strides = [1, 1, 1]} : vector<2x8x64xf32> to vector<1x8x64xf32>
    %166 = vector.shape_cast %165 : vector<1x8x64xf32> to vector<8x64xf32>
    %cst_87 = arith.constant dense<0.000000e+00> : vector<8x64xf32>
    %167 = tpu.matmul %161, %166, %cst_87 {dimension_numbers = #tpu.dot_dimension_numbers<[1], [0], [0], [1], [0, 0, 1, 1], [], []>} : vector<8x8xf32>, vector<8x64xf32>, vector<8x64xf32> -> vector<8x64xf32>
    %168 = tpu.concatenate %164, %167 in 0 : vector<8x64xf32>, vector<8x64xf32> -> vector<16x64xf32>
    %c0_88 = arith.constant 0 : index
    %c0_89 = arith.constant 0 : index
    %169 = vector.load %arg19[%c0_88, %c0_89] : memref<64x64xf32, #tpu.memory_space<vmem>>, vector<64x64xf32>
    %cst_90 = arith.constant dense<0.000000e+00> : vector<16x64xf32>
    %170 = tpu.matmul %168, %169, %cst_90 {dimension_numbers = #tpu.dot_dimension_numbers<[1], [0], [0], [1], [0, 0, 1, 1], [], []>} : vector<16x64xf32>, vector<64x64xf32>, vector<16x64xf32> -> vector<16x64xf32>
    %c0_91 = arith.constant 0 : index
    %c0_92 = arith.constant 0 : index
    %171 = vector.load %arg20[%c0_91, %c0_92] : memref<1x64xf32, #tpu.memory_space<vmem>>, vector<1x64xf32>
    %172 = vector.broadcast %171 : vector<1x64xf32> to vector<16x64xf32>
    %173 = arith.addf %170, %172 : vector<16x64xf32>
    %cst_93 = arith.constant dense<0.000000e+00> : vector<16xf32>
    %174 = vector.multi_reduction <add>, %173, %cst_93 [1] : vector<16x64xf32> to vector<16xf32>
    %175 = vector.shape_cast %174 : vector<16xf32> to vector<16x1xf32>
    %cst_94 = arith.constant 6.400000e+01 : f32
    %176 = vector.broadcast %cst_94 : f32 to vector<16x1xf32>
    %177 = arith.divf %175, %176 : vector<16x1xf32>
    %178 = vector.broadcast %177 : vector<16x1xf32> to vector<16x64xf32>
    %179 = arith.subf %173, %178 : vector<16x64xf32>
    %180 = arith.mulf %179, %179 : vector<16x64xf32>
    %cst_95 = arith.constant dense<0.000000e+00> : vector<16xf32>
    %181 = vector.multi_reduction <add>, %180, %cst_95 [1] : vector<16x64xf32> to vector<16xf32>
    %182 = vector.shape_cast %181 : vector<16xf32> to vector<16x1xf32>
    %cst_96 = arith.constant 6.400000e+01 : f32
    %183 = vector.broadcast %cst_96 : f32 to vector<16x1xf32>
    %184 = arith.divf %182, %183 : vector<16x1xf32>
    %185 = vector.broadcast %177 : vector<16x1xf32> to vector<16x64xf32>
    %186 = arith.subf %173, %185 : vector<16x64xf32>
    %cst_97 = arith.constant 9.99999974E-6 : f32
    %187 = vector.broadcast %cst_97 : f32 to vector<16x1xf32>
    %188 = arith.addf %184, %187 : vector<16x1xf32>
    %189 = math.rsqrt %188 : vector<16x1xf32>
    %190 = vector.broadcast %189 : vector<16x1xf32> to vector<16x64xf32>
    %191 = arith.mulf %186, %190 : vector<16x64xf32>
    %192 = vector.broadcast %0 : vector<1x64xf32> to vector<16x64xf32>
    %193 = arith.mulf %191, %192 : vector<16x64xf32>
    %194 = vector.broadcast %1 : vector<1x64xf32> to vector<16x64xf32>
    %195 = arith.addf %193, %194 : vector<16x64xf32>
    %196 = vector.shape_cast %195 : vector<16x64xf32> to vector<2x8x64xf32>
    %c0_98 = arith.constant 0 : index
    %c0_99 = arith.constant 0 : index
    %197 = vector.load %arg21[%c0_98, %c0_99] : memref<64x32xf32, #tpu.memory_space<vmem>>, vector<64x32xf32>
    %c0_100 = arith.constant 0 : index
    %c0_101 = arith.constant 0 : index
    %198 = vector.load %arg22[%c0_100, %c0_101] : memref<1x32xf32, #tpu.memory_space<vmem>>, vector<1x32xf32>
    %c0_102 = arith.constant 0 : index
    %c0_103 = arith.constant 0 : index
    %199 = vector.load %arg23[%c0_102, %c0_103] : memref<1x32xf32, #tpu.memory_space<vmem>>, vector<1x32xf32>
    %200 = vector.shape_cast %196 : vector<2x8x64xf32> to vector<16x64xf32>
    %cst_104 = arith.constant dense<0.000000e+00> : vector<16x32xf32>
    %201 = tpu.matmul %200, %197, %cst_104 {dimension_numbers = #tpu.dot_dimension_numbers<[1], [0], [0], [1], [0, 0, 1, 1], [], []>} : vector<16x64xf32>, vector<64x32xf32>, vector<16x32xf32> -> vector<16x32xf32>
    %202 = vector.broadcast %198 : vector<1x32xf32> to vector<16x32xf32>
    %203 = arith.addf %201, %202 : vector<16x32xf32>
    %204 = math.tanh %203 : vector<16x32xf32>
    %205 = vector.shape_cast %204 : vector<16x32xf32> to vector<2x8x32xf32>
    %206 = vector.shape_cast %199 : vector<1x32xf32> to vector<1x1x32xf32>
    %207 = vector.broadcast %206 : vector<1x1x32xf32> to vector<2x8x32xf32>
    %208 = arith.mulf %205, %207 : vector<2x8x32xf32>
    %cst_105 = arith.constant dense<0.000000e+00> : vector<2x8xf32>
    %209 = vector.multi_reduction <add>, %208, %cst_105 [2] : vector<2x8x32xf32> to vector<2x8xf32>
    %210 = vector.shape_cast %209 : vector<2x8xf32> to vector<2x8x1xf32>
    %cst_106 = arith.constant dense<0xFF800000> : vector<2x1xf32>
    %211 = vector.multi_reduction <maximumf>, %210, %cst_106 [1] : vector<2x8x1xf32> to vector<2x1xf32>
    %212 = vector.shape_cast %211 : vector<2x1xf32> to vector<2x1x1xf32>
    %213 = vector.broadcast %212 : vector<2x1x1xf32> to vector<2x8x1xf32>
    %214 = arith.subf %210, %213 : vector<2x8x1xf32>
    %215 = math.exp %214 : vector<2x8x1xf32>
    %cst_107 = arith.constant dense<0.000000e+00> : vector<2x1xf32>
    %216 = vector.multi_reduction <add>, %215, %cst_107 [1] : vector<2x8x1xf32> to vector<2x1xf32>
    %217 = vector.shape_cast %216 : vector<2x1xf32> to vector<2x1x1xf32>
    %218 = tpu.reciprocal %217 {approx = true} : vector<2x1x1xf32> -> vector<2x1x1xf32>
    %219 = vector.broadcast %218 : vector<2x1x1xf32> to vector<2x8x1xf32>
    %220 = arith.mulf %215, %219 : vector<2x8x1xf32>
    %221 = vector.broadcast %220 : vector<2x8x1xf32> to vector<2x8x64xf32>
    %222 = arith.mulf %221, %196 : vector<2x8x64xf32>
    %cst_108 = arith.constant dense<0.000000e+00> : vector<2x64xf32>
    %223 = vector.multi_reduction <add>, %222, %cst_108 [1] : vector<2x8x64xf32> to vector<2x64xf32>
    %224 = math.tanh %223 : vector<2x64xf32>
    %c0_109 = arith.constant 0 : index
    %c0_110 = arith.constant 0 : index
    %225 = vector.load %arg24[%c0_109, %c0_110] : memref<64x32xf32, #tpu.memory_space<vmem>>, vector<64x32xf32>
    %c0_111 = arith.constant 0 : index
    %c0_112 = arith.constant 0 : index
    %226 = vector.load %arg25[%c0_111, %c0_112] : memref<1x32xf32, #tpu.memory_space<vmem>>, vector<1x32xf32>
    %c0_113 = arith.constant 0 : index
    %c0_114 = arith.constant 0 : index
    %227 = vector.load %arg26[%c0_113, %c0_114] : memref<1x32xf32, #tpu.memory_space<vmem>>, vector<1x32xf32>
    %cst_115 = arith.constant dense<0.000000e+00> : vector<2x32xf32>
    %228 = tpu.matmul %151, %225, %cst_115 {dimension_numbers = #tpu.dot_dimension_numbers<[1], [0], [0], [1], [0, 0, 1, 1], [], []>} : vector<2x64xf32>, vector<64x32xf32>, vector<2x32xf32> -> vector<2x32xf32>
    %229 = vector.broadcast %226 : vector<1x32xf32> to vector<2x32xf32>
    %230 = arith.addf %228, %229 : vector<2x32xf32>
    %231 = math.tanh %230 : vector<2x32xf32>
    %232 = vector.broadcast %227 : vector<1x32xf32> to vector<2x32xf32>
    %233 = arith.mulf %231, %232 : vector<2x32xf32>
    %cst_116 = arith.constant dense<0.000000e+00> : vector<2xf32>
    %234 = vector.multi_reduction <add>, %233, %cst_116 [1] : vector<2x32xf32> to vector<2xf32>
    %235 = vector.shape_cast %234 : vector<2xf32> to vector<2x1xf32>
    %cst_117 = arith.constant dense<0.000000e+00> : vector<2x32xf32>
    %236 = tpu.matmul %224, %225, %cst_117 {dimension_numbers = #tpu.dot_dimension_numbers<[1], [0], [0], [1], [0, 0, 1, 1], [], []>} : vector<2x64xf32>, vector<64x32xf32>, vector<2x32xf32> -> vector<2x32xf32>
    %237 = vector.broadcast %226 : vector<1x32xf32> to vector<2x32xf32>
    %238 = arith.addf %236, %237 : vector<2x32xf32>
    %239 = math.tanh %238 : vector<2x32xf32>
    %240 = vector.broadcast %227 : vector<1x32xf32> to vector<2x32xf32>
    %241 = arith.mulf %239, %240 : vector<2x32xf32>
    %cst_118 = arith.constant dense<0.000000e+00> : vector<2xf32>
    %242 = vector.multi_reduction <add>, %241, %cst_118 [1] : vector<2x32xf32> to vector<2xf32>
    %243 = vector.shape_cast %242 : vector<2xf32> to vector<2x1xf32>
    %cst_119 = arith.constant dense<0.000000e+00> : vector<2x32xf32>
    %244 = tpu.matmul %8, %225, %cst_119 {dimension_numbers = #tpu.dot_dimension_numbers<[1], [0], [0], [1], [0, 0, 1, 1], [], []>} : vector<2x64xf32>, vector<64x32xf32>, vector<2x32xf32> -> vector<2x32xf32>
    %245 = vector.broadcast %226 : vector<1x32xf32> to vector<2x32xf32>
    %246 = arith.addf %244, %245 : vector<2x32xf32>
    %247 = math.tanh %246 : vector<2x32xf32>
    %248 = vector.broadcast %227 : vector<1x32xf32> to vector<2x32xf32>
    %249 = arith.mulf %247, %248 : vector<2x32xf32>
    %cst_120 = arith.constant dense<0.000000e+00> : vector<2xf32>
    %250 = vector.multi_reduction <add>, %249, %cst_120 [1] : vector<2x32xf32> to vector<2xf32>
    %251 = vector.shape_cast %250 : vector<2xf32> to vector<2x1xf32>
    %cst_121 = arith.constant dense<0.000000e+00> : vector<2x32xf32>
    %252 = tpu.matmul %15, %225, %cst_121 {dimension_numbers = #tpu.dot_dimension_numbers<[1], [0], [0], [1], [0, 0, 1, 1], [], []>} : vector<2x64xf32>, vector<64x32xf32>, vector<2x32xf32> -> vector<2x32xf32>
    %253 = vector.broadcast %226 : vector<1x32xf32> to vector<2x32xf32>
    %254 = arith.addf %252, %253 : vector<2x32xf32>
    %255 = math.tanh %254 : vector<2x32xf32>
    %256 = vector.broadcast %227 : vector<1x32xf32> to vector<2x32xf32>
    %257 = arith.mulf %255, %256 : vector<2x32xf32>
    %cst_122 = arith.constant dense<0.000000e+00> : vector<2xf32>
    %258 = vector.multi_reduction <add>, %257, %cst_122 [1] : vector<2x32xf32> to vector<2xf32>
    %259 = vector.shape_cast %258 : vector<2xf32> to vector<2x1xf32>
    %260 = arith.maximumf %235, %243 : vector<2x1xf32>
    %261 = arith.maximumf %251, %259 : vector<2x1xf32>
    %262 = arith.maximumf %260, %261 : vector<2x1xf32>
    %263 = arith.subf %235, %262 : vector<2x1xf32>
    %264 = math.exp %263 : vector<2x1xf32>
    %265 = arith.subf %243, %262 : vector<2x1xf32>
    %266 = math.exp %265 : vector<2x1xf32>
    %267 = arith.subf %251, %262 : vector<2x1xf32>
    %268 = math.exp %267 : vector<2x1xf32>
    %269 = arith.subf %259, %262 : vector<2x1xf32>
    %270 = math.exp %269 : vector<2x1xf32>
    %271 = arith.addf %264, %266 : vector<2x1xf32>
    %272 = arith.addf %271, %268 : vector<2x1xf32>
    %273 = arith.addf %272, %270 : vector<2x1xf32>
    %274 = tpu.reciprocal %273 {approx = true} : vector<2x1xf32> -> vector<2x1xf32>
    %275 = arith.mulf %264, %274 : vector<2x1xf32>
    %276 = vector.broadcast %275 : vector<2x1xf32> to vector<2x64xf32>
    %277 = arith.mulf %276, %151 : vector<2x64xf32>
    %278 = arith.mulf %266, %274 : vector<2x1xf32>
    %279 = vector.broadcast %278 : vector<2x1xf32> to vector<2x64xf32>
    %280 = arith.mulf %279, %224 : vector<2x64xf32>
    %281 = arith.addf %277, %280 : vector<2x64xf32>
    %282 = arith.mulf %268, %274 : vector<2x1xf32>
    %283 = vector.broadcast %282 : vector<2x1xf32> to vector<2x64xf32>
    %284 = arith.mulf %283, %8 : vector<2x64xf32>
    %285 = arith.addf %281, %284 : vector<2x64xf32>
    %286 = arith.mulf %270, %274 : vector<2x1xf32>
    %287 = vector.broadcast %286 : vector<2x1xf32> to vector<2x64xf32>
    %288 = arith.mulf %287, %15 : vector<2x64xf32>
    %289 = arith.addf %285, %288 : vector<2x64xf32>
    %290 = math.tanh %289 : vector<2x64xf32>
    %c0_123 = arith.constant 0 : index
    %c0_124 = arith.constant 0 : index
    %291 = vector.load %arg27[%c0_123, %c0_124] : memref<2x64xf32, #tpu.memory_space<vmem>>, vector<2x64xf32>
    tpu.vector_store %arg27[%c0_123, %c0_124], %290 {strides = array<i32>} : memref<2x64xf32, #tpu.memory_space<vmem>>, vector<2x64xf32>,
    %c0_125 = arith.constant 0 : index
    %c0_126 = arith.constant 0 : index
    %292 = vector.load %arg28[%c0_125, %c0_126] : memref<2x64xf32, #tpu.memory_space<vmem>>, vector<2x64xf32>
    tpu.vector_store %arg28[%c0_125, %c0_126], %8 {strides = array<i32>} : memref<2x64xf32, #tpu.memory_space<vmem>>, vector<2x64xf32>,
    %c0_127 = arith.constant 0 : index
    %c0_128 = arith.constant 0 : index
    %293 = vector.load %arg29[%c0_127, %c0_128] : memref<2x64xf32, #tpu.memory_space<vmem>>, vector<2x64xf32>
    tpu.vector_store %arg29[%c0_127, %c0_128], %15 {strides = array<i32>} : memref<2x64xf32, #tpu.memory_space<vmem>>, vector<2x64xf32>,
    %c0_129 = arith.constant 0 : index
    %c0_130 = arith.constant 0 : index
    %294 = vector.load %arg30[%c0_129, %c0_130] : memref<2x64xf32, #tpu.memory_space<vmem>>, vector<2x64xf32>
    tpu.vector_store %arg30[%c0_129, %c0_130], %151 {strides = array<i32>} : memref<2x64xf32, #tpu.memory_space<vmem>>, vector<2x64xf32>,
    %c0_131 = arith.constant 0 : index
    %c0_132 = arith.constant 0 : index
    %295 = vector.load %arg31[%c0_131, %c0_132] : memref<2x64xf32, #tpu.memory_space<vmem>>, vector<2x64xf32>
    tpu.vector_store %arg31[%c0_131, %c0_132], %224 {strides = array<i32>} : memref<2x64xf32, #tpu.memory_space<vmem>>, vector<2x64xf32>,
    return
  }
}

</mosaic_0001>

<bundles_post_ra>
// kernel: news_encoder_forward.1
= control target key start
LH: loop header
LB: loop body
LE: loop exit
PB: predicated region body
PF: predicated region fallthrough
CT: control target
= control target key end

     0   :  { %s4009_s6 = smov 1   ;;  %s4010_s10 = smov 2   ;;  %s4645_s0 = inlined_call_operand.smem [shape: u32[32], index: -1, kind: input, shape index: {}] }
   0x1   :  { %s4062_s5 = sld [smem:[%s4645_s0]]   ;;  %s4011_s14 = smov 3  }
   0x2   :  { %s4067_s9 = sld [smem:[%s4645_s0 + %s4009_s6]]   ;;  %s4012_s18 = smov 4  }
   0x3   :  { %s4072_s13 = sld [smem:[%s4645_s0 + %s4010_s10]]   ;;  %s4013_s22 = smov 5  }
   0x4   :  { %s4077_s17 = sld [smem:[%s4645_s0 + %s4011_s14]]   ;;  %s4014_s26 = smov 6  }
   0x5   :  { %s4082_s21 = sld [smem:[%s4645_s0 + %s4012_s18]]   ;;  %s4015_s30 = smov 7  }
   0x6   :  { %s4087_s25 = sld [smem:[%s4645_s0 + %s4013_s22]]   ;;  %s4016_s4 = smov 8  }
   0x7   :  { %s4092_s29 = sld [smem:[%s4645_s0 + %s4014_s26]]   ;;  %s4017_s10 = smov 9  }
   0x8   :  { %s4097_s3 = sld [smem:[%s4645_s0 + %s4015_s30]]   ;;  %s4018_s15 = smov 10  }
   0x9   :  { %s4102_s8 = sld [smem:[%s4645_s0 + %s4016_s4]]   ;;  %s4019_s20 = smov 11  }
   0xa   :  { %s4107_s14 = sld [smem:[%s4645_s0 + %s4017_s10]]   ;;  %s4020_s26 = smov 12  }
   0xb   :  { %s4112_s19 = sld [smem:[%s4645_s0 + %s4018_s15]]   ;;  %s4021_s1 = smov 13  }
   0xc   :  { %s4117_s24 = sld [smem:[%s4645_s0 + %s4019_s20]]   ;;  %s4022_s7 = smov 14  }
   0xd   :  { %s4122_s30 = sld [smem:[%s4645_s0 + %s4020_s26]]   ;;  %s4023_s15 = smov 15  }
   0xe   :  { %s4127_s6 = sld [smem:[%s4645_s0 + %s4021_s1]]   ;;  %s4024_s22 = smov 16  }
   0xf   :  { %s4132_s12 = sld [smem:[%s4645_s0 + %s4022_s7]]   ;;  %s4025_s28 = smov 17  }
  0x10   :  { %s4137_s20 = sld [smem:[%s4645_s0 + %s4023_s15]]   ;;  %s4026_s7 = smov 18  }
  0x11   :  { %s4142_s27 = sld [smem:[%s4645_s0 + %s4024_s22]]   ;;  %s4027_s15 = smov 19  }
  0x12   :  { %4650 = sst [smem:[#allocation14_spill]] %s4117_s24  ;;  %s4028_s22 = smov 20  }
  0x13   :  { %4651 = sst [smem:[#allocation15_spill]] %s4122_s30 }
  0x14   :  { %s4147_s4 = sld [smem:[%s4645_s0 + %s4025_s28]]   ;;  %s4029_s28 = smov 21  }
  0x15   :  { %4652 = sst [smem:[#allocation16_spill]] %s4132_s12 }
  0x16   :  { %4653 = sst [smem:[#allocation17_spill]] %s4137_s20 }
  0x17   :  { %s4152_s12 = sld [smem:[%s4645_s0 + %s4026_s7]]   ;;  %s4030_s7 = smov 22  }
  0x18   :  { %s4157_s20 = sld [smem:[%s4645_s0 + %s4027_s15]]   ;;  %s4031_s15 = smov 23  }
  0x19   :  { %s4162_s30 = sld [smem:[%s4645_s0 + %s4028_s22]]   ;;  %s4032_s22 = smov 24  }
  0x1a   :  { %s4167_s24 = sld [smem:[%s4645_s0 + %s4029_s28]]   ;;  %s4033_s28 = smov 25  }
  0x1d   :  { %4654 = sst [smem:[#allocation18_spill]] %s4152_s12 }
  0x1e   :  { %4655 = sst [smem:[#allocation19_spill]] %s4157_s20 }
  0x1f   :  { %4656 = sst [smem:[#allocation20_spill]] %s4162_s30 }
  0x20   :  { %4657 = sst [smem:[#allocation21_spill]] %s4167_s24 }
  0x21   :  { %s4172_s12 = sld [smem:[%s4645_s0 + %s4030_s7]]   ;;  %s4034_s7 = smov 26  }
  0x22   :  { %s4177_s20 = sld [smem:[%s4645_s0 + %s4031_s15]]   ;;  %s4035_s15 = smov 27  }
  0x23   :  { %s4182_s30 = sld [smem:[%s4645_s0 + %s4032_s22]]   ;;  %s4036_s22 = smov 28  }
  0x24   :  { %s4187_s24 = sld [smem:[%s4645_s0 + %s4033_s28]]   ;;  %s4037_s28 = smov 29  }
  0x27   :  { %4658 = sst [smem:[#allocation22_spill]] %s4172_s12 }
  0x28   :  { %4659 = sst [smem:[#allocation23_spill]] %s4177_s20 }
  0x29   :  { %4660 = sst [smem:[#allocation24_spill]] %s4182_s30 }
  0x2a   :  { %4661 = sst [smem:[#allocation25_spill]] %s4187_s24 }
  0x2b   :  { %s4192_s12 = sld [smem:[%s4645_s0 + %s4034_s7]]   ;;  %s4038_s7 = smov 30  }
  0x2c   :  { %s4197_s20 = sld [smem:[%s4645_s0 + %s4035_s15]]   ;;  %s4039_s15 = smov 31  }
  0x2d   :  { %s4202_s30 = sld [smem:[%s4645_s0 + %s4036_s22]]  }
  0x2e   :  { %s4207_s24 = sld [smem:[%s4645_s0 + %s4037_s28]]  }
  0x31   :  { %4662 = sst [smem:[#allocation26_spill]] %s4192_s12 }
  0x32   :  { %4663 = sst [smem:[#allocation27_spill]] %s4197_s20 }
  0x33   :  { %s4212_s12 = sld [smem:[%s4645_s0 + %s4038_s7]]  }
  0x34   :  { %s4217_s20 = sld [smem:[%s4645_s0 + %s4039_s15]]  }
  0x35   :  { %69 = vsyncpa [#allocation4], 0 }
  0x36   :  { %70 = vsyncpa [#allocation6], 0  ;;  %v214_v0 = vld [vmem:[%s4092_s29] sm:$0xff]  ;;  %v215_v1 = vld [vmem:[%s4092_s29 + $0x8] sm:$0xff]  ;;  %v4040_v3 = vmov 0.0|0.0   ;;  %vm4041_vm0 = vmmov 0  }
  0x37   :  { %v129_v2 = vld [vmem:[%s4082_s21] sm:$0xff]  ;;  %3609 = vmatprep.subr.bf16.mxu1 %v4040_v3  ;;  %v3610_v4 = vpack.c.bf16 %v215_v1, %v214_v0  ;;  %3606 = vmatprep.subr.bf16.mxu0 %v4040_v3  ;;  %v130_v5 = vld [vmem:[%s4082_s21 + $0x8] sm:$0xff]  ;;  %v4042_v7 = vmov 0.0   ;;  %vm138_vm1 = vcmask 130048   ;;  %v387_v15 = vld [vmem:[%s4107_s14 + $0x10] sm:$0xff] }
  0x38   :  { %v385_v6 = vld [vmem:[%s4107_s14] sm:$0xff]  ;;  %3328 = vmatprep.mubr.msk.f32.mxu1 %vm4041_vm0, %v4042_v7  ;;  %v3607_v8 = vpack.c.bf16 %v130_v5, %v129_v2  ;;  %v386_v9 = vld [vmem:[%s4107_s14 + $0x8] sm:$0xff]  ;;  %3321 = vmatprep.mubr.msk.f32.mxu0 %vm4041_vm0, %v4042_v7  ;;  %v388_v16 = vld [vmem:[%s4107_s14 + $0x18] sm:$0xff] }
  0x39   :  { %v299_v10 = vld [vmem:[%s4102_s8] sm:$0xff]  ;;  %v300_v11 = vld [vmem:[%s4102_s8 + $0x8] sm:$0xff]  ;;  %3611 = vmatpush3.bf16.msra.mxu1 %v3610_v4  ;;  %v3620_v13 = vpack.c.bf16 %v386_v9, %v385_v6  ;;  %v3624_v18 = vpack.c.bf16 %v388_v16, %v387_v15  ;;  %v301_v19 = vld [vmem:[%s4102_s8 + $0x10] sm:$0xff] }
  0x3a   :  { %v213_v12 = vld [vmem:[%s4067_s9] sm:$0x3]  ;;  %v3612_v14 = vpack.c.bf16 %v300_v11, %v299_v10  ;;  %3608 = vmatpush3.bf16.msra.mxu0 %v3607_v8  ;;  %v302_v20 = vld [vmem:[%s4102_s8 + $0x18] sm:$0xff] }
  0x3b   :  { %v128_v17 = vld [vmem:[%s4062_s5] sm:$0x3]  ;;  %3621 = vmatprep.subr.bf16.mxu1 %v3620_v13  ;;  %v3616_v21 = vpack.c.bf16 %v302_v20, %v301_v19 }
  0x3c   :  { %3613 = vmatprep.subr.bf16.mxu0 %v3612_v14 }
  0x3d   :  { %71 = vsyncpa [#allocation9], 0  ;;  %3329 = vmatmul.mubr.msk.f32.vlgmr.msra.gmra.mrb[0].mxu1 %vm138_vm1, %v213_v12  ;;  %v297_v22 = vld [vmem:[%s4072_s13] sm:$0xff]  ;;  %vm303_vm2 = vcmask 261120   ;;  %3322 = vmatmul.mubr.msk.f32.vlgmr.msra.gmra.mrb[0].mxu0 %vm138_vm1, %v128_v17  ;;  %v298_v23 = vld [vmem:[%s4072_s13 + $0x8] sm:$0xff]  ;;  %s4043_s0 = smov 112  }
  0x3e   :  { %3623 = vmatpush3.bf16.msra.mxu1 %v3620_v13  ;;  %3615 = vmatpush3.bf16.msra.mxu0 %v3612_v14  ;;  %v3125_v24 = vld [vmem:[%s4097_s3] ss:$0 sm:$0xff]  ;;  %vm3018_vm3 = vcmask 517120   ;;  %v465_v39 = vld [vmem:[%s4112_s19 + $0x8] sm:$0xff]  ;;  %v466_v40 = vld [vmem:[%s4112_s19 + $0x10] sm:$0xff]  ;;  %vm697_vm4 = vcmask 64512  }
  0x3f   :  { %3625 = vmatprep.subr.bf16.mxu1 %v3624_v18  ;;  %3617 = vmatprep.subr.bf16.mxu0 %v3616_v21  ;;  %v3123_v25 = vld [vmem:[%s4087_s25] ss:$0 sm:$0xff]  ;;  %v467_v42 = vld [vmem:[%s4112_s19 + $0x18] sm:$0xff]  ;;  %s4044_s5 = smov 96   ;;  %s4045_s9 = smov 80   ;;  %vm1210_vm5 = vcmask 261248  }
  0x40   :  { %3350 = vmatprep.mubr.msk.f32.mxu1 %vm303_vm2, %v297_v22  ;;  %3339 = vmatprep.mubr.msk.f32.mxu0 %vm303_vm2, %v297_v22  ;;  %v464_v38 = vld [vmem:[%s4112_s19] sm:$0xff]  ;;  %v3632_v43 = vpack.c.bf16 %v467_v42, %v466_v40  ;;  %s4046_s13 = smov 16   ;;  %s4047_s21 = smov 32   ;;  %vm1553_vm6 = vcmask 392448   ;;  %vm1901_vm7 = vcmask 523264   ;;  %vm1896_vm8 = vcmask 523648  }
  0x41   :  { %v3628_v41 = vpack.c.bf16 %v465_v39, %v464_v38  ;;  %s4048_s25 = smov 48   ;;  %s4665_s29 = sld [smem:[#allocation14_spill]]  ;;  %vm2663_vm9 = vcmask 1041409   ;;  %vm2745_vm10 = vcmask 254976  }
  0x42   :  { %3627 = vmatpush3.bf16.msra.mxu1 %v3624_v18  ;;  %3619 = vmatpush3.bf16.msra.mxu0 %v3616_v21  ;;  %s4666_s3 = sld [smem:[#allocation15_spill]]  ;;  %s4667_s8 = sld [smem:[#allocation19_spill]] }
  0x43   :  { %3364 = vmatprep.subr.mxu1 %v4042_v7  ;;  %3629 = vmatprep.subr.bf16.mxu0 %v3628_v41  ;;  %s4668_s14 = sld [smem:[#allocation20_spill]]  ;;  %s4669_s19 = sld [smem:[#allocation16_spill]] }
  0x44   :  { %s4673_s22 = sld [smem:[#allocation22_spill]]  ;;  %s4674_s23 = sld [smem:[#allocation23_spill]] }
  0x45   :  { %3351 = vmatmul.mubr.msk.f32.vlgmr.msra.gmra.mrb[2].mxu1 %vm303_vm2, %v298_v23  ;;  %3340 = vmatmul.mubr.msk.f32.vlgmr.msra.gmra.mrb[2].mxu0 %vm303_vm2, %v298_v23  ;;  %s4675_s26 = sld [smem:[#allocation25_spill]]  ;;  %s4676_s28 = sld [smem:[#allocation26_spill]] }
  0x46   :  { %3366 = vmatprep.mubr.msk.f32.mxu1 %vm4041_vm0, %v4042_v7  ;;  %3361 = vmatprep.mubr.msk.f32.mxu0 %vm303_vm2, %v297_v22  ;;  %s4049_s1 = smov [#allocation5]   ;;  %s4050_s7 = smov [#allocation8]  }
  0x47   :  { %3631 = vmatpush3.bf16.msra.mxu0 %v3628_v41  ;;  %s3040_s2 = sshll.u32 %s4049_s1, 4  ;;  %s3060_s10 = sshll.u32 %s4050_s7, 4  ;;  %s3041_s2 = int_to_ptr.vmem [resolvable:$true] %s3040_s2  ;;  %s3061_s10 = int_to_ptr.vmem [resolvable:$true] %s3060_s10 }
  0x48   :  { %3633 = vmatprep.subr.bf16.mxu0 %v3632_v43  ;;  %s3893_s11 = scalar_lea.vmem %s3041_s2, 32  ;;  %p3898_p1 = scmp.lt.s32.totalorder %s3041_s2, %s3041_s2 }
  0x49   :  { %p3894_p0 = scmp.ne.s32.totalorder %s3041_s2, %s3893_s11  ;;  %p3899_p2 = scmp.lt.s32.totalorder %s3893_s11, %s3893_s11 }
  0x4b   :  { %3635 = vmatpush3.bf16.msra.mxu0 %v3632_v43  ;;  %p3900_p3 = por %p3899_p2, %p3898_p1 }
  0x4c   :  { %3374 = vmatprep.subr.mxu0 %v4042_v7 }
  0x4d   :  { %p3901_p4 = pnand %p3900_p3, %p3894_p0 }
  0x4e   :  { %3362 = vmatmul.mubr.msk.f32.vlgmr.msra.gmra.mrb[4].mxu0 %vm303_vm2, %v298_v23 }
  0x4f   :  { %3376 = vmatprep.mubr.msk.f32.mxu0 %vm4041_vm0, %v4042_v7 }
 0x110   :  { %v292_v26 = vpop.f32.mrb[0].mxu1  ;;  %v208_v29 = vpop.f32.mrb[0].mxu0 }
 0x111   :  { %v293_v27 = vadd.f32 %v3125_v24, %v292_v26  ;;  %v3330_v28 = vpop.f32.mrb[1].mxu1  ;;  %v209_v30 = vadd.f32 %v3123_v25, %v208_v29  ;;  %v3323_v31 = vpop.f32.mrb[1].mxu0 }
 0x113   :  { %3793 = vtanh.f32 %v293_v27 }
 0x114   :  { %3795 = vtanh.f32 %v209_v30 }
 0x118   :  { %v4253_v32 = vpop.f32.mrb[2].mxu1  ;;  %v4259_v34 = vpop.f32.mrb[2].mxu0 }
 0x119   :  { %948 = vrot.lane.b32.xlu1 %v4253_v32, %s4043_s0  ;;  %v4257_v33 = vpop.f32.mrb[3].mxu1  ;;  %v4263_v35 = vpop.f32.mrb[3].mxu0 }
 0x11a   :  { %3365 = vmatpush3.xpose.msk.msra.mxu1 %vm138_vm1, %v4257_v33 }
 0x11b   :  { %3369 = vmatprep.subr.mxu1 %v4042_v7 }
 0x11d   :  { %v4266_v36 = vpop.eup %3793  ;;  %868 = vrot.lane.b32.xlu1 %v4263_v35, %s4043_s0  ;;  %3367 = vmatmul.mubr.msk.f32.vlgmr.msra.gmra.mrb[4].mxu1 %vm138_vm1, %v4263_v35 }
 0x11e   :  { %v4272_v37 = vpop.eup %3795  ;;  %3370 = vmatpush3.xpose.msk.msra.mxu1 %vm138_vm1, %v4253_v32  ;;  %3371 = vmatprep.mubr.msk.f32.mxu1 %vm4041_vm0, %v4042_v7  ;;  %3021 = vst.msk [vmem:[#allocation7] sm:$0x3] %vm3018_vm3, %v4266_v36 }
 0x11f   :  { %3379 = vmatprep.subr.mxu1 %v4042_v7  ;;  %3020 = vst.msk [vmem:[#allocation5] sm:$0x3] %vm3018_vm3, %v4272_v37 }
 0x121   :  { %3372 = vmatmul.mubr.msk.f32.vlgmr.msra.gmra.mrb[6].mxu1 %vm138_vm1, %v4259_v34  ;;  %v4301_v62 = vpop.f32.mrb[4].mxu0 }
 0x122   :  { %3381 = vmatprep.mubr.msk.f32.mxu1 %vm4041_vm0, %v4042_v7  ;;  %v4303_v63 = vpop.f32.mrb[5].mxu0  ;;  %3380 = vmatpush3.msra.mxu1 %v4301_v62 }
 0x123   :  { %3375 = vmatpush3.msra.mxu0 %v4303_v63  ;;  %3389 = vmatprep.subr.mxu1 %v4042_v7 }
 0x124   :  { %3384 = vmatprep.subr.mxu0 %v4042_v7 }
 0x18b   :  { %v949_v0 = vpop.permute.xlu1 %948 }
 0x18f   :  { %v869_v1 = vpop.permute.xlu1 %868 }
 0x1f0   :  { %v615_v44 = vpop.f32.mrb[4].mxu1 }
 0x1f1   :  { %v695_v45 = vmul.f32 0.25, %v615_v44  ;;  %v3368_v46 = vpop.f32.mrb[5].mxu1 }
 0x1f3   :  { %v698_v47 = vsel %vm697_vm4, %v695_v45, -inf }
 0x1f4   :  { %699 = vmax.xlane.f32.xlu0 %v698_v47  ;;  %v691_v48 = vpop.f32.mrb[6].mxu1 }
 0x1f5   :  { %v696_v49 = vmul.f32 0.25, %v691_v48  ;;  %v3373_v50 = vpop.f32.mrb[7].mxu1 }
 0x1f7   :  { %v701_v51 = vsel %vm697_vm4, %v696_v49, -inf }
 0x1f8   :  { %702 = vmax.xlane.f32.xlu0 %v701_v51 }
 0x20e   :  { %870 = vrot.lane.b32.xlu0 %v4257_v33, %s4043_s0 }
 0x281   :  { %v700_v52 = vpop.xlane.xlu0 %699 }
 0x282   :  { %v704_v53 = vsub.f32 %v695_v45, %v700_v52 }
 0x284   :  { %v706_v54 = vmul.f32 1.442695, %v704_v53 }
 0x285   :  { %v703_v55 = vpop.xlane.xlu0 %702 }
 0x286   :  { %3797 = vpow2.f32 %v706_v54  ;;  %v705_v56 = vsub.f32 %v696_v49, %v703_v55 }
 0x288   :  { %v708_v57 = vmul.f32 1.442695, %v705_v56 }
 0x289   :  { %v871_v8 = vpop.permute.xlu0 %870 }
 0x28a   :  { %3799 = vpow2.f32 %v708_v57 }
 0x290   :  { %v3798_v58 = vpop.eup %3797 }
 0x291   :  { %v710_v59 = vsel %vm697_vm4, %v3798_v58, 0.0 }
 0x292   :  { %711 = vadd.xlane.f32.xlu1 %v710_v59 }
 0x294   :  { %v3800_v60 = vpop.eup %3799 }
 0x295   :  { %v713_v61 = vsel %vm697_vm4, %v3800_v60, 0.0 }
 0x296   :  { %714 = vadd.xlane.f32.xlu1 %v713_v61 }
 0x2a7   :  { %946 = vrot.lane.b32.xlu1 %v4259_v34, %s4043_s0 }
 0x31f   :  { %v712_v2 = vpop.xlane.xlu1 %711 }
 0x320   :  { %3801 = vrcp.f32 %v712_v2 }
 0x323   :  { %v715_v4 = vpop.xlane.xlu1 %714 }
 0x324   :  { %3803 = vrcp.f32 %v715_v4 }
 0x327   :  { %v947_v11 = vpop.permute.xlu1 %946 }
 0x32a   :  { %v3802_v5 = vpop.eup %3801 }
 0x32b   :  { %v718_v6 = vmul.f32 %v3802_v5, %v3798_v58 }
 0x32d   :  { %3377 = vmatmul.mubr.msk.f32.vlgmr.msra.gmra.mrb[6].mxu0 %vm697_vm4, %v718_v6 }
 0x32e   :  { %v3804_v9 = vpop.eup %3803  ;;  %3385 = vmatpush3.xpose.msk.msra.mxu0 %vm138_vm1, %v871_v8  ;;  %3386 = vmatprep.mubr.msk.f32.mxu0 %vm4041_vm0, %v4042_v7 }
 0x32f   :  { %v719_v10 = vmul.f32 %v3804_v9, %v3800_v60  ;;  %3394 = vmatprep.subr.mxu0 %v4042_v7 }
 0x331   :  { %3382 = vmatmul.mubr.msk.f32.vlgmr.msra.gmra.mrb[8].mxu1 %vm697_vm4, %v719_v10  ;;  %3387 = vmatmul.mubr.msk.f32.vlgmr.msra.gmra.mrb[8].mxu0 %vm138_vm1, %v869_v1 }
 0x332   :  { %3390 = vmatpush3.xpose.msk.msra.mxu1 %vm138_vm1, %v949_v0  ;;  %3391 = vmatprep.mubr.msk.f32.mxu1 %vm4041_vm0, %v4042_v7 }
 0x333   :  { %3399 = vmatprep.subr.mxu1 %v4042_v7  ;;  %3396 = vmatprep.mubr.msk.f32.mxu0 %vm4041_vm0, %v4042_v7 }
 0x335   :  { %3392 = vmatmul.mubr.msk.f32.vlgmr.msra.gmra.mrb[10].mxu1 %vm138_vm1, %v947_v11 }
 0x336   :  { %3401 = vmatprep.mubr.msk.f32.mxu1 %vm4041_vm0, %v4042_v7 }
 0x400   :  { %v789_v12 = vpop.f32.mrb[6].mxu0 }
 0x401   :  { %866 = vst.msk [vmem:[#allocation2] sm:$0xff] %vm138_vm1, %v789_v12  ;;  %v3378_v13 = vpop.f32.mrb[7].mxu0 }
 0x404   :  { %v862_v14 = vpop.f32.mrb[8].mxu1  ;;  %v942_v15 = vpop.f32.mrb[8].mxu0 }
 0x405   :  { %867 = vst.msk [vmem:[#allocation2 + $0x8] sm:$0xff] %vm138_vm1, %v862_v14  ;;  %v1024_v16 = vmul.f32 0.25, %v942_v15  ;;  %v3383_v17 = vpop.f32.mrb[9].mxu1  ;;  %v3388_v18 = vpop.f32.mrb[9].mxu0 }
 0x407   :  { %v1026_v19 = vsel %vm697_vm4, %v1024_v16, -inf }
 0x408   :  { %v1020_v20 = vpop.f32.mrb[10].mxu1  ;;  %1027 = vmax.xlane.f32.xlu0 %v1026_v19 }
 0x409   :  { %v1025_v21 = vmul.f32 0.25, %v1020_v20  ;;  %v3393_v22 = vpop.f32.mrb[11].mxu1 }
 0x40b   :  { %v1029_v23 = vsel %vm697_vm4, %v1025_v21, -inf }
 0x40c   :  { %1030 = vmax.xlane.f32.xlu1 %v1029_v23 }
 0x41d   :  { %1126 = vrot.lane.b32.xlu1 %v4301_v62, %s4043_s0 }
 0x41e   :  { %1049 = vrot.lane.b32.xlu0 %v4303_v63, %s4043_s0 }
 0x421   :  { %1215 = vrot.lane.b32.xlu1 %v4257_v33, %s4044_s5 }
 0x425   :  { %1293 = vrot.lane.b32.xlu1 %v4253_v32, %s4044_s5 }
 0x429   :  { %1291 = vrot.lane.b32.xlu1 %v4259_v34, %s4044_s5 }
 0x495   :  { %v1028_v24 = vpop.xlane.xlu0 %1027 }
 0x496   :  { %v1032_v25 = vsub.f32 %v1024_v16, %v1028_v24 }
 0x498   :  { %v1034_v26 = vmul.f32 1.442695, %v1032_v25 }
 0x499   :  { %v1031_v27 = vpop.xlane.xlu1 %1030  ;;  %v1050_v28 = vpop.permute.xlu0 %1049 }
 0x49a   :  { %3805 = vpow2.f32 %v1034_v26  ;;  %v1033_v29 = vsub.f32 %v1025_v21, %v1031_v27  ;;  %3395 = vmatpush3.msra.mxu0 %v1050_v28 }
 0x49b   :  { %3404 = vmatprep.subr.mxu0 %v4042_v7 }
 0x49c   :  { %v1036_v30 = vmul.f32 1.442695, %v1033_v29 }
 0x49d   :  { %v1127_v31 = vpop.permute.xlu1 %1126 }
 0x49e   :  { %3807 = vpow2.f32 %v1036_v30  ;;  %3400 = vmatpush3.msra.mxu1 %v1127_v31 }
 0x49f   :  { %3409 = vmatprep.subr.mxu1 %v4042_v7 }
 0x4a1   :  { %v1216_v44 = vpop.permute.xlu1 %1215 }
 0x4a4   :  { %v3806_v38 = vpop.eup %3805 }
 0x4a5   :  { %v1038_v39 = vsel %vm697_vm4, %v3806_v38, 0.0  ;;  %v1294_v48 = vpop.permute.xlu1 %1293 }
 0x4a6   :  { %1039 = vadd.xlane.f32.xlu0 %v1038_v39 }
 0x4a8   :  { %v3808_v40 = vpop.eup %3807 }
 0x4a9   :  { %v1041_v41 = vsel %vm697_vm4, %v3808_v40, 0.0  ;;  %v1292_v51 = vpop.permute.xlu1 %1291 }
 0x4aa   :  { %1042 = vadd.xlane.f32.xlu0 %v1041_v41 }
 0x4c0   :  { %1213 = vrot.lane.b32.xlu0 %v4263_v35, %s4044_s5 }
 0x533   :  { %v1040_v42 = vpop.xlane.xlu0 %1039 }
 0x534   :  { %3809 = vrcp.f32 %v1040_v42 }
 0x537   :  { %v1043_v43 = vpop.xlane.xlu0 %1042 }
 0x538   :  { %3811 = vrcp.f32 %v1043_v43 }
 0x53b   :  { %v1214_v50 = vpop.permute.xlu0 %1213 }
 0x53e   :  { %v3810_v45 = vpop.eup %3809 }
 0x53f   :  { %v1046_v46 = vmul.f32 %v3810_v45, %v3806_v38 }
 0x541   :  { %3397 = vmatmul.mubr.msk.f32.vlgmr.msra.gmra.mrb[10].mxu0 %vm697_vm4, %v1046_v46 }
 0x542   :  { %v3812_v47 = vpop.eup %3811  ;;  %3405 = vmatpush3.xpose.msk.msra.mxu0 %vm138_vm1, %v1216_v44  ;;  %3406 = vmatprep.mubr.msk.f32.mxu0 %vm4041_vm0, %v4042_v7 }
 0x543   :  { %v1047_v49 = vmul.f32 %v3812_v47, %v3808_v40  ;;  %3414 = vmatprep.subr.mxu0 %v4042_v7 }
 0x545   :  { %3402 = vmatmul.mubr.msk.f32.vlgmr.msra.gmra.mrb[12].mxu1 %vm697_vm4, %v1047_v49  ;;  %3407 = vmatmul.mubr.msk.f32.vlgmr.msra.gmra.mrb[12].mxu0 %vm138_vm1, %v1214_v50 }
 0x546   :  { %3410 = vmatpush3.xpose.msk.msra.mxu1 %vm138_vm1, %v1294_v48  ;;  %3411 = vmatprep.mubr.msk.f32.mxu1 %vm4041_vm0, %v4042_v7 }
 0x547   :  { %3419 = vmatprep.subr.mxu1 %v4042_v7  ;;  %3416 = vmatprep.mubr.msk.f32.mxu0 %vm4041_vm0, %v4042_v7 }
 0x549   :  { %3412 = vmatmul.mubr.msk.f32.vlgmr.msra.gmra.mrb[14].mxu1 %vm138_vm1, %v1292_v51 }
 0x54a   :  { %3421 = vmatprep.mubr.msk.f32.mxu1 %vm4041_vm0, %v4042_v7 }
 0x614   :  { %v4363_v52 = vpop.f32.mrb[10].mxu0 }
 0x615   :  { %v3398_v53 = vpop.f32.mrb[11].mxu0 }
 0x618   :  { %v4365_v54 = vpop.f32.mrb[12].mxu1  ;;  %v1287_v55 = vpop.f32.mrb[12].mxu0 }
 0x619   :  { %v1369_v56 = vmul.f32 0.25, %v1287_v55  ;;  %v3403_v57 = vpop.f32.mrb[13].mxu1  ;;  %v3408_v58 = vpop.f32.mrb[13].mxu0 }
 0x61b   :  { %v1371_v59 = vsel %vm697_vm4, %v1369_v56, -inf }
 0x61c   :  { %v1365_v60 = vpop.f32.mrb[14].mxu1  ;;  %1372 = vmax.xlane.f32.xlu0 %v1371_v59 }
 0x61d   :  { %v1370_v61 = vmul.f32 0.25, %v1365_v60  ;;  %v3413_v0 = vpop.f32.mrb[15].mxu1 }
 0x61e   :  { %v2112_v0 = vld [vmem:[%s4142_s27] sm:$0xff] }
 0x61f   :  { %v1374_v1 = vsel %vm697_vm4, %v1370_v61, -inf }
 0x620   :  { %1375 = vmax.xlane.f32.xlu1 %v1374_v1  ;;  %v2113_v1 = vld [vmem:[%s4142_s27 + $0x8] sm:$0xff] }
 0x631   :  { %1469 = vrot.lane.b32.xlu1 %v4301_v62, %s4044_s5 }
 0x632   :  { %1393 = vrot.lane.b32.xlu0 %v4303_v63, %s4044_s5 }
 0x635   :  { %1558 = vrot.lane.b32.xlu1 %v4257_v33, %s4045_s9 }
 0x639   :  { %1636 = vrot.lane.b32.xlu1 %v4253_v32, %s4045_s9 }
 0x63d   :  { %1634 = vrot.lane.b32.xlu1 %v4259_v34, %s4045_s9 }
 0x6a9   :  { %v1373_v2 = vpop.xlane.xlu0 %1372 }
 0x6aa   :  { %v1377_v4 = vsub.f32 %v1369_v56, %v1373_v2  ;;  %v2114_v2 = vld [vmem:[%s4142_s27 + $0x10] sm:$0xff] }
 0x6ac   :  { %v1379_v5 = vmul.f32 1.442695, %v1377_v4  ;;  %v3652_v4 = vpack.c.bf16 %v2113_v1, %v2112_v0  ;;  %v4450_v0 = vld [vmem:[%s4666_s3] ss:$0 sm:$0xff] }
 0x6ad   :  { %v1376_v6 = vpop.xlane.xlu1 %1375  ;;  %v1394_v8 = vpop.permute.xlu0 %1393 }
 0x6ae   :  { %3813 = vpow2.f32 %v1379_v5  ;;  %v1378_v9 = vsub.f32 %v1370_v61, %v1376_v6  ;;  %3415 = vmatpush3.msra.mxu0 %v1394_v8  ;;  %v2115_v5 = vld [vmem:[%s4142_s27 + $0x18] sm:$0xff]  ;;  %v2116_v8 = vld [vmem:[%s4142_s27 + $0x20] sm:$0xff] }
 0x6af   :  { %3424 = vmatprep.subr.mxu0 %v4042_v7  ;;  %v3656_v6 = vpack.c.bf16 %v2115_v5, %v2114_v2 }
 0x6b0   :  { %v1381_v10 = vmul.f32 1.442695, %v1378_v9  ;;  %v2117_v9 = vld [vmem:[%s4142_s27 + $0x28] sm:$0xff] }
 0x6b1   :  { %v1470_v11 = vpop.permute.xlu1 %1469 }
 0x6b2   :  { %3815 = vpow2.f32 %v1381_v10  ;;  %3420 = vmatpush3.msra.mxu1 %v1470_v11  ;;  %v2110_v10 = vld [vmem:[%s4077_s17] sm:$0xff] }
 0x6b3   :  { %3429 = vmatprep.subr.mxu1 %v4042_v7 }
 0x6b5   :  { %v1559_v15 = vpop.permute.xlu1 %1558 }
 0x6b8   :  { %v3814_v32 = vpop.eup %3813 }
 0x6b9   :  { %v1383_v33 = vsel %vm697_vm4, %v3814_v32, 0.0  ;;  %v1637_v19 = vpop.permute.xlu1 %1636 }
 0x6ba   :  { %1384 = vadd.xlane.f32.xlu0 %v1383_v33  ;;  %v3660_v33 = vpack.c.bf16 %v2117_v9, %v2116_v8  ;;  %v2355_v8 = vld [vmem:[%s4667_s8 + $0x8] sm:$0xff] }
 0x6bc   :  { %v3816_v34 = vpop.eup %3815 }
 0x6bd   :  { %v1386_v12 = vsel %vm697_vm4, %v3816_v34, 0.0  ;;  %v1635_v21 = vpop.permute.xlu1 %1634 }
 0x6be   :  { %1387 = vadd.xlane.f32.xlu0 %v1386_v12  ;;  %v2119_v12 = vld [vmem:[%s4142_s27 + $0x38] sm:$0xff] }
 0x6d4   :  { %1556 = vrot.lane.b32.xlu0 %v4263_v35, %s4045_s9 }
 0x747   :  { %v1385_v13 = vpop.xlane.xlu0 %1384 }
 0x748   :  { %3817 = vrcp.f32 %v1385_v13 }
 0x74b   :  { %v1388_v14 = vpop.xlane.xlu0 %1387 }
 0x74c   :  { %3819 = vrcp.f32 %v1388_v14  ;;  %v2111_v14 = vld [vmem:[%s4077_s17 + $0x8] sm:$0xff]  ;;  %s4664_s17 = sld [smem:[#allocation18_spill]] }
 0x74f   :  { %v1557_v35 = vpop.permute.xlu0 %1556 }
 0x752   :  { %v3818_v16 = vpop.eup %3817 }
 0x753   :  { %v1391_v17 = vmul.f32 %v3818_v16, %v3814_v32 }
 0x755   :  { %3417 = vmatmul.mubr.msk.f32.vlgmr.msra.gmra.mrb[14].mxu0 %vm697_vm4, %v1391_v17 }
 0x756   :  { %v3820_v18 = vpop.eup %3819  ;;  %3425 = vmatpush3.xpose.msk.msra.mxu0 %vm138_vm1, %v1559_v15  ;;  %3426 = vmatprep.mubr.msk.f32.mxu0 %vm4041_vm0, %v4042_v7 }
 0x757   :  { %v1392_v20 = vmul.f32 %v3820_v18, %v3816_v34  ;;  %3434 = vmatprep.subr.mxu0 %v4042_v7  ;;  %v2118_v34 = vld [vmem:[%s4142_s27 + $0x30] sm:$0xff]  ;;  %s4671_s27 = sld [smem:[#allocation21_spill]] }
 0x758   :  { %v3664_v13 = vpack.c.bf16 %v2119_v12, %v2118_v34  ;;  %v2357_v34 = vld [vmem:[%s4667_s8 + $0x18] sm:$0xff] }
 0x759   :  { %3422 = vmatmul.mubr.msk.f32.vlgmr.msra.gmra.mrb[16].mxu1 %vm697_vm4, %v1392_v20  ;;  %3427 = vmatmul.mubr.msk.f32.vlgmr.msra.gmra.mrb[16].mxu0 %vm138_vm1, %v1557_v35 }
 0x75a   :  { %3430 = vmatpush3.xpose.msk.msra.mxu1 %vm138_vm1, %v1637_v19  ;;  %3431 = vmatprep.mubr.msk.f32.mxu1 %vm4041_vm0, %v4042_v7 }
 0x75b   :  { %3439 = vmatprep.subr.mxu1 %v4042_v7  ;;  %3436 = vmatprep.mubr.msk.f32.mxu0 %vm4041_vm0, %v4042_v7 }
 0x75d   :  { %3432 = vmatmul.mubr.msk.f32.vlgmr.msra.gmra.mrb[18].mxu1 %vm138_vm1, %v1635_v21 }
 0x75e   :  { %3441 = vmatprep.mubr.msk.f32.mxu1 %vm4041_vm0, %v4042_v7 }
 0x828   :  { %v1465_v22 = vpop.f32.mrb[14].mxu0 }
 0x829   :  { %v3418_v23 = vpop.f32.mrb[15].mxu0 }
 0x82c   :  { %v1541_v24 = vpop.f32.mrb[16].mxu1  ;;  %v1630_v25 = vpop.f32.mrb[16].mxu0 }
 0x82d   :  { %v1712_v26 = vmul.f32 0.25, %v1630_v25  ;;  %v3423_v27 = vpop.f32.mrb[17].mxu1  ;;  %v3428_v28 = vpop.f32.mrb[17].mxu0 }
 0x82f   :  { %v1714_v29 = vsel %vm697_vm4, %v1712_v26, -inf }
 0x830   :  { %v1708_v30 = vpop.f32.mrb[18].mxu1  ;;  %1715 = vmax.xlane.f32.xlu0 %v1714_v29 }
 0x831   :  { %v1713_v31 = vmul.f32 0.25, %v1708_v30  ;;  %v3433_v38 = vpop.f32.mrb[19].mxu1  ;;  %v1945_v30 = vld [vmem:[%s4127_s6] sm:$0xff] }
 0x833   :  { %v1717_v39 = vsel %vm697_vm4, %v1713_v31, -inf }
 0x834   :  { %1718 = vmax.xlane.f32.xlu1 %v1717_v39  ;;  %v1947_v39 = vld [vmem:[%s4127_s6 + $0x10] sm:$0xff] }
 0x845   :  { %1812 = vrot.lane.b32.xlu1 %v4301_v62, %s4045_s9 }
 0x849   :  { %1204 = vrot.lane.b32.xlu1 %v4363_v52, %s4046_s13 }
 0x84d   :  { %1206 = vrot.lane.b32.xlu1 %v4365_v54, %s4046_s13 }
 0x851   :  { %1549 = vrot.lane.b32.xlu1 %v1541_v24, %s4047_s21 }
 0x8bd   :  { %v1716_v40 = vpop.xlane.xlu0 %1715 }
 0x8be   :  { %v1720_v41 = vsub.f32 %v1712_v26, %v1716_v40  ;;  %v1948_v40 = vld [vmem:[%s4127_s6 + $0x18] sm:$0xff] }
 0x8c0   :  { %v1722_v42 = vmul.f32 1.442695, %v1720_v41  ;;  %v3640_v41 = vpack.c.bf16 %v1948_v40, %v1947_v39 }
 0x8c1   :  { %v1719_v43 = vpop.xlane.xlu1 %1718 }
 0x8c2   :  { %3821 = vpow2.f32 %v1722_v42  ;;  %v1721_v44 = vsub.f32 %v1713_v31, %v1719_v43  ;;  %v1946_v31 = vld [vmem:[%s4127_s6 + $0x8] sm:$0xff]  ;;  %v3163_v43 = vld [vmem:[%s4147_s4] ss:$0 sm:$0xff]  ;;  %s4672_s4 = sld [smem:[#allocation24_spill]] }
 0x8c3   :  { %v3636_v38 = vpack.c.bf16 %v1946_v31, %v1945_v30  ;;  %v3159_v31 = vld [vmem:[%s4669_s19] ss:$0 sm:$0xff] }
 0x8c4   :  { %v1724_v45 = vmul.f32 1.442695, %v1721_v44 }
 0x8c5   :  { %v1813_v46 = vpop.permute.xlu1 %1812 }
 0x8c6   :  { %3823 = vpow2.f32 %v1724_v45  ;;  %3440 = vmatpush3.msra.mxu1 %v1813_v46 }
 0x8c7   :  { %3653 = vmatprep.subr.bf16.mxu1 %v3652_v4 }
 0x8c9   :  { %v1205_v47 = vpop.permute.xlu1 %1204 }
 0x8ca   :  { %1211 = vst.msk [vmem:[#allocation2] sm:$0xff] %vm1210_vm5, %v1205_v47  ;;  %v1949_v47 = vld [vmem:[%s4127_s6 + $0x20] sm:$0xff] }
 0x8cc   :  { %v3822_v62 = vpop.eup %3821 }
 0x8cd   :  { %v1207_v48 = vpop.permute.xlu1 %1206  ;;  %v1726_v49 = vsel %vm697_vm4, %v3822_v62, 0.0 }
 0x8ce   :  { %1212 = vst.msk [vmem:[#allocation2 + $0x8] sm:$0xff] %vm1210_vm5, %v1207_v48  ;;  %1727 = vadd.xlane.f32.xlu0 %v1726_v49  ;;  %v1951_v49 = vld [vmem:[%s4127_s6 + $0x30] sm:$0xff] }
 0x8d0   :  { %v3824_v50 = vpop.eup %3823 }
 0x8d1   :  { %v1550_v51 = vpop.permute.xlu1 %1549  ;;  %v1729_v52 = vsel %vm697_vm4, %v3824_v50, 0.0 }
 0x8d2   :  { %1555 = vst.msk [vmem:[#allocation2 + $0x8] sm:$0xff] %vm1553_vm6, %v1550_v51  ;;  %1730 = vadd.xlane.f32.xlu0 %v1729_v52  ;;  %v2210_v52 = vld [vmem:[%s4664_s17] sm:$0xff] }
 0x8e8   :  { %1736 = vrot.lane.b32.xlu0 %v4303_v63, %s4045_s9 }
 0x8ec   :  { %1547 = vrot.lane.b32.xlu0 %v1465_v22, %s4047_s21 }
 0x95b   :  { %v1728_v53 = vpop.xlane.xlu0 %1727 }
 0x95c   :  { %3825 = vrcp.f32 %v1728_v53 }
 0x95f   :  { %v1731_v54 = vpop.xlane.xlu0 %1730 }
 0x960   :  { %3827 = vrcp.f32 %v1731_v54 }
 0x963   :  { %v1737_v55 = vpop.permute.xlu0 %1736 }
 0x964   :  { %3435 = vmatpush3.msra.mxu0 %v1737_v55 }
 0x965   :  { %3637 = vmatprep.subr.bf16.mxu0 %v3636_v38 }
 0x966   :  { %v3826_v56 = vpop.eup %3825 }
 0x967   :  { %v1734_v57 = vmul.f32 %v3826_v56, %v3822_v62  ;;  %v1548_v58 = vpop.permute.xlu0 %1547  ;;  %v1950_v62 = vld [vmem:[%s4127_s6 + $0x28] sm:$0xff] }
 0x968   :  { %1554 = vst.msk [vmem:[#allocation2] sm:$0xff] %vm1553_vm6, %v1548_v58  ;;  %v3644_v48 = vpack.c.bf16 %v1950_v62, %v1949_v47 }
 0x969   :  { %3437 = vmatmul.mubr.msk.f32.vlgmr.msra.gmra.mrb[18].mxu0 %vm697_vm4, %v1734_v57 }
 0x96a   :  { %v3828_v63 = vpop.eup %3827  ;;  %3639 = vmatpush3.bf16.msra.mxu0 %v3636_v38 }
 0x96b   :  { %v1735_v59 = vmul.f32 %v3828_v63, %v3824_v50  ;;  %3641 = vmatprep.subr.bf16.mxu0 %v3640_v41  ;;  %v1952_v50 = vld [vmem:[%s4127_s6 + $0x38] sm:$0xff]  ;;  %s4670_s6 = sld [smem:[#allocation17_spill]] }
 0x96c   :  { %v3648_v51 = vpack.c.bf16 %v1952_v50, %v1951_v49 }
 0x96d   :  { %3442 = vmatmul.mubr.msk.f32.vlgmr.msra.gmra.mrb[20].mxu1 %vm697_vm4, %v1735_v59 }
 0x96e   :  { %3479 = vmatprep.mubr.msk.f32.mxu1 %vm1901_vm7, %v2110_v10  ;;  %3655 = vmatpush3.bf16.msra.mxu1 %v3652_v4 }
 0x96f   :  { %3657 = vmatprep.subr.bf16.mxu1 %v3656_v6  ;;  %3643 = vmatpush3.bf16.msra.mxu0 %v3640_v41 }
 0x970   :  { %3645 = vmatprep.subr.bf16.mxu0 %v3644_v48 }
 0x971   :  { %v3162_v47 = vld [vmem:[%s4670_s6] ss:$0 sm:$0xff] }
 0x972   :  { %3659 = vmatpush3.bf16.msra.mxu1 %v3656_v6  ;;  %v2354_v6 = vld [vmem:[%s4667_s8] sm:$0xff] }
 0x973   :  { %3661 = vmatprep.subr.bf16.mxu1 %v3660_v33  ;;  %3647 = vmatpush3.bf16.msra.mxu0 %v3644_v48 }
 0x974   :  { %3649 = vmatprep.subr.bf16.mxu0 %v3648_v51 }
 0x976   :  { %3663 = vmatpush3.bf16.msra.mxu1 %v3660_v33  ;;  %v2356_v33 = vld [vmem:[%s4667_s8 + $0x10] sm:$0xff] }
 0x977   :  { %3665 = vmatprep.subr.bf16.mxu1 %v3664_v13  ;;  %3651 = vmatpush3.bf16.msra.mxu0 %v3648_v51  ;;  %v3672_v12 = vpack.c.bf16 %v2357_v34, %v2356_v33  ;;  %v2647_v33 = vld [vmem:[%s4672_s4 + $0x10] sm:$0xff] }
 0x978   :  { %3482 = vmatprep.subr.mxu0 %v4042_v7 }
 0x97a   :  { %3667 = vmatpush3.bf16.msra.mxu1 %v3664_v13  ;;  %v2358_v13 = vld [vmem:[%s4667_s8 + $0x20] sm:$0xff] }
 0x97b   :  { %3487 = vmatprep.subr.mxu1 %v4042_v7 }
 0x97d   :  { %3480 = vmatmul.mubr.msk.f32.vlgmr.msra.gmra.mrb[22].mxu1 %vm1901_vm7, %v2111_v14  ;;  %v2359_v14 = vld [vmem:[%s4667_s8 + $0x28] sm:$0xff] }
 0x97e   :  { %3489 = vmatprep.mubr.msk.f32.mxu1 %vm4041_vm0, %v4042_v7 }
 0xa3c   :  { %v1808_v60 = vpop.f32.mrb[18].mxu0 }
 0xa3d   :  { %1890 = vrot.lane.b32.xlu0 %v1808_v60, %s4048_s25  ;;  %v3438_v61 = vpop.f32.mrb[19].mxu0  ;;  %v4447_v60 = vld [vmem:[%s4665_s29] ss:$0 sm:$0xff] }
 0xa40   :  { %v1884_v11 = vpop.f32.mrb[20].mxu1 }
 0xa41   :  { %1892 = vrot.lane.b32.xlu1 %v1884_v11, %s4048_s25  ;;  %v3443_v32 = vpop.f32.mrb[21].mxu1 }
 0xa42   :  { %v3668_v32 = vpack.c.bf16 %v2355_v8, %v2354_v6  ;;  %v2486_v6 = vld [vmem:[%s4671_s27 + $0x30] sm:$0xff]  ;;  %v2487_v8 = vld [vmem:[%s4671_s27 + $0x38] sm:$0xff] }
 0xa50   :  { %v3481_v42 = vpop.f32.mrb[22].mxu1 }
 0xa51   :  { %v2199_v44 = vpop.f32.mrb[23].mxu1  ;;  %v2205_v45 = vadd.f32 %v3481_v42, %v3163_v43 }
 0xa52   :  { %v2200_v46 = vadd.f32 %v3163_v43, %v2199_v44 }
 0xa53   :  { %3829 = vtanh.f32 %v2205_v45 }
 0xa5d   :  { %v3830_v53 = vpop.eup %3829 }
 0xa5e   :  { %3488 = vmatpush3.msra.mxu1 %v3830_v53 }
 0xa5f   :  { %3490 = vmatmul.mubr.msk.f32.vlgmr.msra.gmra.mrb[24].mxu1 %vm697_vm4, %v2210_v52 }
 0xaaf   :  { %v1891_v15 = vpop.permute.xlu0 %1890 }
 0xab0   :  { %1897 = vst.msk [vmem:[#allocation2] sm:$0xff] %vm1896_vm8, %v1891_v15  ;;  %v3676_v15 = vpack.c.bf16 %v2359_v14, %v2358_v13  ;;  %v2649_v14 = vld [vmem:[%s4672_s4 + $0x20] sm:$0xff] }
 0xab3   :  { %v1893_v16 = vpop.permute.xlu1 %1892 }
 0xab4   :  { %1898 = vst.msk [vmem:[#allocation2 + $0x8] sm:$0xff] %vm1896_vm8, %v1893_v16  ;;  %v2360_v16 = vld [vmem:[%s4667_s8 + $0x30] sm:$0xff] }
 0xab7   :  { %v1899_v17 = vld [vmem:[#allocation2] sm:$0xff] }
 0xab8   :  { %v1902_v18 = vsel %vm1901_vm7, %v1899_v17, 0.0 }
 0xab9   :  { %1903 = vadd.xlane.f32.xlu0 %v1902_v18 }
 0xabb   :  { %v1900_v19 = vld [vmem:[#allocation2 + $0x8] sm:$0xff] }
 0xabc   :  { %v1905_v20 = vsel %vm1901_vm7, %v1900_v19, 0.0 }
 0xabd   :  { %1906 = vadd.xlane.f32.xlu1 %v1905_v20 }
 0xb46   :  { %v1904_v35 = vpop.xlane.xlu0 %1903 }
 0xb47   :  { %v1909_v21 = vmul.f32 0.015625, %v1904_v35 }
 0xb49   :  { %v1911_v22 = vsub.f32 %v1899_v17, %v1909_v21  ;;  %v2361_v17 = vld [vmem:[%s4667_s8 + $0x38] sm:$0xff] }
 0xb4a   :  { %v1907_v23 = vpop.xlane.xlu1 %1906  ;;  %v3680_v18 = vpack.c.bf16 %v2361_v17, %v2360_v16  ;;  %v2651_v17 = vld [vmem:[%s4672_s4 + $0x30] sm:$0xff] }
 0xb4b   :  { %v1910_v24 = vmul.f32 0.015625, %v1907_v23  ;;  %v1913_v25 = vmul.f32 %v1911_v22, %v1911_v22 }
 0xb4d   :  { %v1912_v26 = vsub.f32 %v1900_v19, %v1910_v24  ;;  %v1915_v27 = vsel %vm1901_vm7, %v1913_v25, 0.0  ;;  %v2350_v19 = vpop.f32.mrb[24].mxu1  ;;  %v3168_v24 = vld [vmem:[%s4668_s14] ss:$0 sm:$0xff] }
 0xb4e   :  { %1916 = vadd.xlane.f32.xlu0 %v1915_v27  ;;  %v3491_v20 = vpop.f32.mrb[25].mxu1 }
 0xb4f   :  { %v1914_v28 = vmul.f32 %v1912_v26, %v1912_v26 }
 0xb51   :  { %v1918_v29 = vsel %vm1901_vm7, %v1914_v28, 0.0 }
 0xb52   :  { %1919 = vadd.xlane.f32.xlu0 %v1918_v29 }
 0xbdb   :  { %v1917_v54 = vpop.xlane.xlu0 %1916 }
 0xbdc   :  { %v1921_v55 = vmul.f32 0.015625, %v1917_v54 }
 0xbde   :  { %v1923_v56 = vadd.f32 1e-05, %v1921_v55 }
 0xbdf   :  { %v1920_v57 = vpop.xlane.xlu0 %1919 }
 0xbe0   :  { %3831 = vrsqrt.f32 %v1923_v56  ;;  %v1922_v58 = vmul.f32 0.015625, %v1920_v57  ;;  %v2480_v56 = vld [vmem:[%s4671_s27] sm:$0xff]  ;;  %v2481_v57 = vld [vmem:[%s4671_s27 + $0x8] sm:$0xff] }
 0xbe2   :  { %v1924_v63 = vadd.f32 1e-05, %v1922_v58  ;;  %v3684_v58 = vpack.c.bf16 %v2481_v57, %v2480_v56 }
 0xbe4   :  { %3833 = vrsqrt.f32 %v1924_v63  ;;  %3685 = vmatprep.subr.bf16.mxu1 %v3684_v58  ;;  %v2482_v63 = vld [vmem:[%s4671_s27 + $0x10] sm:$0xff] }
 0xbe5   :  { %3835 = vtanh.f32 %v2200_v46  ;;  %3687 = vmatpush3.bf16.msra.mxu1 %v3684_v58 }
 0xbea   :  { %v3832_v59 = vpop.eup %3831 }
 0xbeb   :  { %v1927_v61 = vmul.f32 %v3832_v59, %v1911_v22  ;;  %v2483_v59 = vld [vmem:[%s4671_s27 + $0x18] sm:$0xff] }
 0xbed   :  { %v1935_v1 = vmul.f32 %v4447_v60, %v1927_v61  ;;  %v3688_v61 = vpack.c.bf16 %v2483_v59, %v2482_v63 }
 0xbee   :  { %v3834_v2 = vpop.eup %3833 }
 0xbef   :  { %v1928_v4 = vmul.f32 %v3834_v2, %v1912_v26  ;;  %v4454_v5 = vadd.f32 %v4450_v0, %v1935_v1  ;;  %v3836_v10 = vpop.eup %3835  ;;  %3689 = vmatprep.subr.bf16.mxu1 %v3688_v61  ;;  %v2484_v1 = vld [vmem:[%s4671_s27 + $0x20] sm:$0xff]  ;;  %v2485_v2 = vld [vmem:[%s4671_s27 + $0x28] sm:$0xff] }
 0xbf0   :  { %3691 = vmatpush3.bf16.msra.mxu1 %v3688_v61 }
 0xbf1   :  { %3460 = vmatprep.mubr.msk.f32.mxu0 %vm1901_vm7, %v4454_v5  ;;  %v1936_v9 = vmul.f32 %v4447_v60, %v1928_v4  ;;  %v3692_v4 = vpack.c.bf16 %v2485_v2, %v2484_v1 }
 0xbf3   :  { %v4462_v11 = vadd.f32 %v4450_v0, %v1936_v9  ;;  %3693 = vmatprep.subr.bf16.mxu1 %v3692_v4  ;;  %v3696_v9 = vpack.c.bf16 %v2487_v8, %v2486_v6 }
 0xbf4   :  { %3695 = vmatpush3.bf16.msra.mxu1 %v3692_v4 }
 0xbf5   :  { %3461 = vmatmul.mubr.msk.f32.vlgmr.msra.gmra.mrb[20].mxu0 %vm1901_vm7, %v4462_v11  ;;  %3697 = vmatprep.subr.bf16.mxu1 %v3696_v9 }
 0xbf6   :  { %3483 = vmatpush3.msra.mxu0 %v3836_v10  ;;  %3484 = vmatprep.mubr.msk.f32.mxu0 %vm4041_vm0, %v4042_v7  ;;  %v2645_v10 = vld [vmem:[%s4672_s4] sm:$0xff] }
 0xbf7   :  { %3669 = vmatprep.subr.bf16.mxu0 %v3668_v32 }
 0xbf8   :  { %3699 = vmatpush3.bf16.msra.mxu1 %v3696_v9 }
 0xbf9   :  { %3485 = vmatmul.mubr.msk.f32.vlgmr.msra.gmra.mrb[22].mxu0 %vm697_vm4, %v2210_v52  ;;  %3712 = vmatprep.subr.bf16.mxu1 %v4040_v3 }
 0xbfa   :  { %3671 = vmatpush3.bf16.msra.mxu0 %v3668_v32  ;;  %v2646_v32 = vld [vmem:[%s4672_s4 + $0x8] sm:$0xff] }
 0xbfb   :  { %3673 = vmatprep.subr.bf16.mxu0 %v3672_v12  ;;  %v4509_v34 = vpack.c.bf16 %v2646_v32, %v2645_v10 }
 0xbfe   :  { %3675 = vmatpush3.bf16.msra.mxu0 %v3672_v12  ;;  %v2648_v12 = vld [vmem:[%s4672_s4 + $0x18] sm:$0xff] }
 0xbff   :  { %3677 = vmatprep.subr.bf16.mxu0 %v3676_v15  ;;  %v4513_v13 = vpack.c.bf16 %v2648_v12, %v2647_v33 }
 0xc02   :  { %3679 = vmatpush3.bf16.msra.mxu0 %v3676_v15  ;;  %v2650_v15 = vld [vmem:[%s4672_s4 + $0x28] sm:$0xff] }
 0xc03   :  { %3681 = vmatprep.subr.bf16.mxu0 %v3680_v18  ;;  %v4519_v16 = vpack.c.bf16 %v2650_v15, %v2649_v14 }
 0xc06   :  { %3683 = vmatpush3.bf16.msra.mxu0 %v3680_v18  ;;  %v2652_v18 = vld [vmem:[%s4672_s4 + $0x38] sm:$0xff] }
 0xc07   :  { %3700 = vmatprep.subr.bf16.mxu0 %v4040_v3 }
 0xcc8   :  { %v3462_v35 = vpop.f32.mrb[20].mxu0 }
 0xcc9   :  { %v2033_v21 = vpop.f32.mrb[21].mxu0  ;;  %v2039_v38 = vadd.f32 %v3462_v35, %v3159_v31 }
 0xcca   :  { %v2034_v39 = vadd.f32 %v3159_v31, %v2033_v21 }
 0xccb   :  { %3837 = vtanh.f32 %v2039_v38 }
 0xccc   :  { %v2280_v22 = vpop.f32.mrb[22].mxu0  ;;  %3839 = vtanh.f32 %v2034_v39 }
 0xccd   :  { %v3486_v23 = vpop.f32.mrb[23].mxu0  ;;  %3508 = vmatprep.mubr.msk.f32.mxu0 %vm1901_vm7, %v2280_v22 }
 0xcce   :  { %3509 = vmatmul.mubr.msk.f32.vlgmr.msra.gmra.mrb[24].mxu0 %vm1901_vm7, %v2350_v19  ;;  %v4525_v19 = vpack.c.bf16 %v2652_v18, %v2651_v17 }
 0xccf   :  { %3546 = vmatprep.mubr.msk.f32.mxu0 %vm4041_vm0, %v4042_v7  ;;  %3702 = vmatpush3.bf16.msra.mxu0 %v4509_v34 }
 0xcd0   :  { %3703 = vmatprep.subr.bf16.mxu0 %v4040_v3 }
 0xcd3   :  { %3705 = vmatpush3.bf16.msra.mxu0 %v4513_v13 }
 0xcd4   :  { %3706 = vmatprep.subr.bf16.mxu0 %v4040_v3 }
 0xcd5   :  { %v3838_v45 = vpop.eup %3837 }
 0xcd6   :  { %v3840_v62 = vpop.eup %3839  ;;  %v2051_v51 = vmul.f32 %v3838_v45, %v3162_v47 }
 0xcd7   :  { %v2050_v53 = vmul.f32 %v3840_v62, %v3162_v47  ;;  %3708 = vmatpush3.bf16.msra.mxu0 %v4519_v16 }
 0xcd8   :  { %v2055_v54 = vsel %vm303_vm2, %v2051_v51, 0.0  ;;  %3709 = vmatprep.subr.bf16.mxu0 %v4040_v3 }
 0xcd9   :  { %v2052_v55 = vsel %vm303_vm2, %v2050_v53, 0.0 }
 0xcdb   :  { %3711 = vmatpush3.bf16.msra.mxu0 %v4525_v19 }
 0xcdc   :  { %3724 = vmatprep.subr.bf16.mxu0 %v4040_v3 }
 0xda1   :  { %v3510_v25 = vpop.f32.mrb[24].mxu0 }
 0xda2   :  { %v2447_v26 = vadd.f32 %v3510_v25, %v3168_v24  ;;  %v2441_v27 = vpop.f32.mrb[25].mxu0 }
 0xda3   :  { %v2442_v28 = vadd.f32 %v3168_v24, %v2441_v27 }
 0xda4   :  { %v2453_v29 = vsel %vm1901_vm7, %v2447_v26, 0.0 }
 0xda5   :  { %2454 = vadd.xlane.f32.xlu1 %v2453_v29  ;;  %v2450_v30 = vsel %vm1901_vm7, %v2442_v28, 0.0 }
 0xda6   :  { %2451 = vadd.xlane.f32.xlu0 %v2450_v30 }
 0xe32   :  { %v2455_v40 = vpop.xlane.xlu1 %2454 }
 0xe33   :  { %v2457_v41 = vmul.f32 0.015625, %v2455_v40  ;;  %v2452_v42 = vpop.xlane.xlu0 %2451 }
 0xe34   :  { %v2456_v43 = vmul.f32 0.015625, %v2452_v42 }
 0xe35   :  { %v4484_v44 = vsub.f32 %v2447_v26, %v2457_v41 }
 0xe36   :  { %v4486_v46 = vsub.f32 %v2442_v28, %v2456_v43 }
 0xe37   :  { %v2461_v48 = vmul.f32 %v4484_v44, %v4484_v44 }
 0xe38   :  { %v2460_v49 = vmul.f32 %v4486_v46, %v4486_v46 }
 0xe39   :  { %v2465_v50 = vsel %vm1901_vm7, %v2461_v48, 0.0 }
 0xe3a   :  { %2466 = vadd.xlane.f32.xlu1 %v2465_v50  ;;  %v2462_v52 = vsel %vm1901_vm7, %v2460_v49, 0.0 }
 0xe3b   :  { %2463 = vadd.xlane.f32.xlu0 %v2462_v52 }
 0xe3e   :  { %2056 = vadd.xlane.f32.xlu1 %v2055_v54 }
 0xe3f   :  { %2053 = vadd.xlane.f32.xlu0 %v2052_v55 }
 0xec7   :  { %v2467_v20 = vpop.xlane.xlu1 %2466 }
 0xec8   :  { %v2469_v35 = vmul.f32 0.015625, %v2467_v20  ;;  %v2464_v21 = vpop.xlane.xlu0 %2463 }
 0xec9   :  { %v2468_v22 = vmul.f32 0.015625, %v2464_v21 }
 0xeca   :  { %v2471_v23 = vadd.f32 1e-05, %v2469_v35 }
 0xecb   :  { %v2470_v24 = vadd.f32 1e-05, %v2468_v22  ;;  %v2057_v25 = vpop.xlane.xlu1 %2056 }
 0xecc   :  { %3841 = vrsqrt.f32 %v2471_v23  ;;  %v2064_v26 = vrot.slane %v2057_v25, 4  ;;  %v2054_v27 = vpop.xlane.xlu0 %2053 }
 0xecd   :  { %3843 = vrsqrt.f32 %v2470_v24  ;;  %v2058_v28 = vrot.slane %v2054_v27, 4 }
 0xece   :  { %v2065_v29 = vmax.f32 %v2057_v25, %v2064_v26 }
 0xecf   :  { %v2059_v30 = vmax.f32 %v2054_v27, %v2058_v28 }
 0xed0   :  { %v2066_v31 = vrot.slane %v2065_v29, 2 }
 0xed1   :  { %v2060_v38 = vrot.slane %v2059_v30, 2 }
 0xed2   :  { %v2067_v39 = vmax.f32 %v2065_v29, %v2066_v31 }
 0xed3   :  { %v2061_v40 = vmax.f32 %v2059_v30, %v2060_v38  ;;  %v3171_v38 = vld [vmem:[%s4673_s22] ss:$0 sm:$0xff] }
 0xed4   :  { %v2068_v41 = vrot.slane %v2067_v39, 1 }
 0xed5   :  { %v2062_v42 = vrot.slane %v2061_v40, 1 }
 0xed6   :  { %v3842_v43 = vpop.eup %3841  ;;  %v2069_v45 = vmax.f32 %v2067_v39, %v2068_v41 }
 0xed7   :  { %v3844_v47 = vpop.eup %3843  ;;  %v2475_v62 = vmul.f32 %v3842_v43, %v4484_v44  ;;  %v2063_v48 = vmax.f32 %v2061_v40, %v2062_v42  ;;  %v3174_v43 = vld [vmem:[%s4674_s23] ss:$0 sm:$0xff] }
 0xed8   :  { %v2071_v49 = vsub.f32 %v2057_v25, %v2069_v45  ;;  %v2474_v50 = vmul.f32 %v3844_v47, %v4486_v46 }
 0xed9   :  { %v2070_v51 = vsub.f32 %v2054_v27, %v2063_v48  ;;  %v2477_v52 = vmul.f32 %v4447_v60, %v2475_v62 }
 0xeda   :  { %v2074_v53 = vmul.f32 1.442695, %v2071_v49  ;;  %v2476_v54 = vmul.f32 %v4447_v60, %v2474_v50 }
 0xedb   :  { %v2072_v55 = vmul.f32 1.442695, %v2070_v51  ;;  %v4538_v57 = vadd.f32 %v4450_v0, %v2477_v52  ;;  %v4581_v51 = vld [vmem:[%s4675_s26] ss:$0 sm:$0xff] }
 0xedc   :  { %3845 = vpow2.f32 %v2074_v53  ;;  %v4535_v56 = vadd.f32 %v4450_v0, %v2476_v54 }
 0xedd   :  { %3847 = vpow2.f32 %v2072_v55  ;;  %v4585_v55 = vld [vmem:[%s4676_s28] ss:$0 sm:$0xff] }
 0xede   :  { %3527 = vmatprep.mubr.msk.f32.mxu1 %vm1901_vm7, %v4535_v56 }
 0xedf   :  { %3528 = vmatmul.mubr.msk.f32.vlgmr.msra.gmra.mrb[26].mxu1 %vm1901_vm7, %v4538_v57 }
 0xee0   :  { %3714 = vmatpush3.bf16.msra.mxu1 %v4509_v34  ;;  %3565 = vmatprep.mubr.msk.f32.mxu1 %vm4041_vm0, %v4042_v7 }
 0xee1   :  { %3715 = vmatprep.subr.bf16.mxu1 %v4040_v3 }
 0xee4   :  { %3717 = vmatpush3.bf16.msra.mxu1 %v4513_v13 }
 0xee5   :  { %3718 = vmatprep.subr.bf16.mxu1 %v4040_v3 }
 0xee6   :  { %v3846_v60 = vpop.eup %3845 }
 0xee7   :  { %v3848_v0 = vpop.eup %3847  ;;  %v2082_v44 = vrot.slane %v3846_v60, 4 }
 0xee8   :  { %v2076_v46 = vrot.slane %v3848_v0, 4  ;;  %3720 = vmatpush3.bf16.msra.mxu1 %v4519_v16 }
 0xee9   :  { %v2083_v58 = vadd.f32 %v3846_v60, %v2082_v44  ;;  %3721 = vmatprep.subr.bf16.mxu1 %v4040_v3 }
 0xeea   :  { %v2077_v63 = vadd.f32 %v3848_v0, %v2076_v46 }
 0xeeb   :  { %v2084_v59 = vrot.slane %v2083_v58, 2 }
 0xeec   :  { %v2078_v61 = vrot.slane %v2077_v63, 2  ;;  %3723 = vmatpush3.bf16.msra.mxu1 %v4525_v19 }
 0xeed   :  { %v2085_v1 = vadd.f32 %v2084_v59, %v2083_v58  ;;  %3736 = vmatprep.subr.bf16.mxu1 %v4040_v3 }
 0xeee   :  { %v2079_v2 = vadd.f32 %v2078_v61, %v2077_v63 }
 0xeef   :  { %v2086_v4 = vrot.slane %v2085_v1, 1 }
 0xef0   :  { %v2080_v6 = vrot.slane %v2079_v2, 1 }
 0xef1   :  { %v2087_v8 = vadd.f32 %v2086_v4, %v2085_v1 }
 0xef2   :  { %v2081_v9 = vadd.f32 %v2080_v6, %v2079_v2 }
 0xef3   :  { %3849 = vrcp.f32 %v2087_v8 }
 0xef4   :  { %3851 = vrcp.f32 %v2081_v9 }
 0xefd   :  { %v3850_v10 = vpop.eup %3849 }
 0xefe   :  { %v3852_v32 = vpop.eup %3851  ;;  %v2091_v33 = vmul.f32 %v3850_v10, %v3846_v60 }
 0xeff   :  { %v2090_v12 = vmul.f32 %v3852_v32, %v3848_v0 }
 0xf00   :  { %v2093_v14 = vmul.f32 %v2091_v33, %v4462_v11 }
 0xf01   :  { %v2092_v15 = vmul.f32 %v2090_v12, %v4454_v5 }
 0xf02   :  { %v2101_v17 = vsel %vm1901_vm7, %v2093_v14, 0.0 }
 0xf03   :  { %v2102_v18 = vrot.slane %v2101_v17, 4  ;;  %v2094_v20 = vsel %vm1901_vm7, %v2092_v15, 0.0 }
 0xf04   :  { %v2095_v35 = vrot.slane %v2094_v20, 4 }
 0xf05   :  { %v2103_v21 = vadd.f32 %v2102_v18, %v2101_v17 }
 0xf06   :  { %v2096_v22 = vadd.f32 %v2095_v35, %v2094_v20 }
 0xf07   :  { %v2104_v23 = vrot.slane %v2103_v21, 2 }
 0xf08   :  { %v2097_v24 = vrot.slane %v2096_v22, 2 }
 0xf09   :  { %v2105_v25 = vadd.f32 %v2104_v23, %v2103_v21 }
 0xf0a   :  { %v2098_v26 = vadd.f32 %v2097_v24, %v2096_v22 }
 0xf0b   :  { %v2106_v27 = vrot.slane %v2105_v25, 1 }
 0xf0c   :  { %v2099_v28 = vrot.slane %v2098_v26, 1 }
 0xf0d   :  { %v2107_v29 = vadd.f32 %v2106_v27, %v2105_v25 }
 0xf0e   :  { %v2100_v30 = vadd.f32 %v2099_v28, %v2098_v26 }
 0xf0f   :  { %3853 = vtanh.f32 %v2107_v29 }
 0xf10   :  { %3855 = vtanh.f32 %v2100_v30 }
 0xf19   :  { %v3854_v5 = vpop.eup %3853 }
 0xf1a   :  { %v3856_v11 = vpop.eup %3855 }
 0xf1b   :  { %v4559_v31 = vsel %vm2663_vm9, %v3854_v5, %v3856_v11 }
 0xf1c   :  { %3547 = vmatmul.mubr.msk.f32.vlgmr.msra.gmra.mrb[26].mxu0 %vm1901_vm7, %v4559_v31  ;;  %3022 = vst.msk [vmem:[#allocation8] sm:$0x3] %vm3018_vm3, %v4559_v31 }
 0xf1d   :  { %3726 = vmatpush3.bf16.msra.mxu0 %v4509_v34  ;;  %3584 = vmatprep.mubr.msk.f32.mxu0 %vm4041_vm0, %v4042_v7 }
 0xf1e   :  { %3727 = vmatprep.subr.bf16.mxu0 %v4040_v3 }
 0xf21   :  { %3729 = vmatpush3.bf16.msra.mxu0 %v4513_v13 }
 0xf22   :  { %3730 = vmatprep.subr.bf16.mxu0 %v4040_v3 }
 0xf25   :  { %3732 = vmatpush3.bf16.msra.mxu0 %v4519_v16 }
 0xf26   :  { %3733 = vmatprep.subr.bf16.mxu0 %v4040_v3 }
 0xf29   :  { %3735 = vmatpush3.bf16.msra.mxu0 %v4525_v19 }
 0xf2c   :  { %3585 = vmatmul.mubr.msk.f32.vlgmr.msra.gmra.mrb[28].mxu0 %vm1901_vm7, %v4272_v37 }
 0xfb2   :  { %v3529_v39 = vpop.f32.mrb[26].mxu1 }
 0xfb3   :  { %v2574_v40 = vadd.f32 %v3529_v39, %v3171_v38  ;;  %v2568_v41 = vpop.f32.mrb[27].mxu1 }
 0xfb4   :  { %v2569_v42 = vadd.f32 %v3171_v38, %v2568_v41 }
 0xfb5   :  { %3857 = vtanh.f32 %v2574_v40 }
 0xfb6   :  { %3859 = vtanh.f32 %v2569_v42 }
 0xfbf   :  { %v3858_v45 = vpop.eup %3857 }
 0xfc0   :  { %v3860_v47 = vpop.eup %3859  ;;  %v2586_v62 = vmul.f32 %v3858_v45, %v3174_v43 }
 0xfc1   :  { %v2585_v48 = vmul.f32 %v3860_v47, %v3174_v43 }
 0xfc2   :  { %v2590_v49 = vsel %vm303_vm2, %v2586_v62, 0.0 }
 0xfc3   :  { %2591 = vadd.xlane.f32.xlu1 %v2590_v49  ;;  %v2587_v50 = vsel %vm303_vm2, %v2585_v48, 0.0 }
 0xfc4   :  { %2588 = vadd.xlane.f32.xlu0 %v2587_v50 }
 0xfef   :  { %v2733_v52 = vpop.f32.mrb[26].mxu0 }
 0xff0   :  { %v2734_v53 = vadd.f32 %v4581_v51, %v2733_v52  ;;  %v3548_v54 = vpop.f32.mrb[27].mxu0 }
 0xff2   :  { %3861 = vtanh.f32 %v2734_v53 }
 0xffc   :  { %v3862_v60 = vpop.eup %3861 }
 0xffd   :  { %v2744_v0 = vmul.f32 %v3862_v60, %v4585_v55 }
 0xfff   :  { %v2898_v44 = vpop.f32.mrb[28].mxu0  ;;  %v2746_v46 = vsel %vm2745_vm10, %v2744_v0, 0.0 }
0x1000   :  { %v2899_v58 = vadd.f32 %v4581_v51, %v2898_v44  ;;  %v3586_v63 = vpop.f32.mrb[29].mxu0  ;;  %2747 = vadd.xlane.f32.xlu0 %v2746_v46 }
0x1002   :  { %3863 = vtanh.f32 %v2899_v58 }
0x100c   :  { %v3864_v59 = vpop.eup %3863 }
0x100d   :  { %v2903_v61 = vmul.f32 %v3864_v59, %v4585_v55 }
0x100f   :  { %v2904_v1 = vsel %vm2745_vm10, %v2903_v61, 0.0 }
0x1010   :  { %2905 = vadd.xlane.f32.xlu0 %v2904_v1 }
0x1050   :  { %v2592_v2 = vpop.xlane.xlu1 %2591 }
0x1051   :  { %v2599_v4 = vrot.slane %v2592_v2, 4  ;;  %v2589_v6 = vpop.xlane.xlu0 %2588 }
0x1052   :  { %v2593_v8 = vrot.slane %v2589_v6, 4 }
0x1053   :  { %v2600_v9 = vmax.f32 %v2592_v2, %v2599_v4 }
0x1054   :  { %v2594_v10 = vmax.f32 %v2589_v6, %v2593_v8 }
0x1055   :  { %v2601_v32 = vrot.slane %v2600_v9, 2 }
0x1056   :  { %v2595_v33 = vrot.slane %v2594_v10, 2 }
0x1057   :  { %v2602_v12 = vmax.f32 %v2600_v9, %v2601_v32 }
0x1058   :  { %v2596_v14 = vmax.f32 %v2594_v10, %v2595_v33 }
0x1059   :  { %v2603_v15 = vrot.slane %v2602_v12, 1 }
0x105a   :  { %v2597_v17 = vrot.slane %v2596_v14, 1 }
0x105b   :  { %v2604_v18 = vmax.f32 %v2602_v12, %v2603_v15 }
0x105c   :  { %v2598_v20 = vmax.f32 %v2596_v14, %v2597_v17 }
0x105d   :  { %v2606_v35 = vsub.f32 %v2592_v2, %v2604_v18 }
0x105e   :  { %v2605_v21 = vsub.f32 %v2589_v6, %v2598_v20 }
0x105f   :  { %v2609_v22 = vmul.f32 1.442695, %v2606_v35 }
0x1060   :  { %v2607_v23 = vmul.f32 1.442695, %v2605_v21 }
0x1061   :  { %3865 = vpow2.f32 %v2609_v22 }
0x1062   :  { %3867 = vpow2.f32 %v2607_v23 }
0x106b   :  { %v3866_v24 = vpop.eup %3865 }
0x106c   :  { %v3868_v25 = vpop.eup %3867  ;;  %v2617_v26 = vrot.slane %v3866_v24, 4 }
0x106d   :  { %v2611_v27 = vrot.slane %v3868_v25, 4 }
0x106e   :  { %v2618_v28 = vadd.f32 %v3866_v24, %v2617_v26 }
0x106f   :  { %v2612_v29 = vadd.f32 %v3868_v25, %v2611_v27 }
0x1070   :  { %v2619_v30 = vrot.slane %v2618_v28, 2 }
0x1071   :  { %v2613_v5 = vrot.slane %v2612_v29, 2 }
0x1072   :  { %v2620_v11 = vadd.f32 %v2619_v30, %v2618_v28 }
0x1073   :  { %v2614_v38 = vadd.f32 %v2613_v5, %v2612_v29 }
0x1074   :  { %v2621_v39 = vrot.slane %v2620_v11, 1 }
0x1075   :  { %v2615_v40 = vrot.slane %v2614_v38, 1 }
0x1076   :  { %v2622_v41 = vadd.f32 %v2621_v39, %v2620_v11 }
0x1077   :  { %v2616_v42 = vadd.f32 %v2615_v40, %v2614_v38 }
0x1078   :  { %3869 = vrcp.f32 %v2622_v41 }
0x1079   :  { %3871 = vrcp.f32 %v2616_v42 }
0x1082   :  { %v3870_v43 = vpop.eup %3869 }
0x1083   :  { %v3872_v45 = vpop.eup %3871  ;;  %v2626_v47 = vmul.f32 %v3870_v43, %v3866_v24 }
0x1084   :  { %v2625_v62 = vmul.f32 %v3872_v45, %v3868_v25 }
0x1085   :  { %v2628_v48 = vmul.f32 %v2626_v47, %v4538_v57 }
0x1086   :  { %v2627_v49 = vmul.f32 %v2625_v62, %v4535_v56 }
0x1087   :  { %v2636_v50 = vsel %vm1901_vm7, %v2628_v48, 0.0 }
0x1088   :  { %v2637_v52 = vrot.slane %v2636_v50, 4  ;;  %v2629_v53 = vsel %vm1901_vm7, %v2627_v49, 0.0 }
0x1089   :  { %v2630_v54 = vrot.slane %v2629_v53, 4 }
0x108a   :  { %v2638_v60 = vadd.f32 %v2637_v52, %v2636_v50 }
0x108b   :  { %v2631_v0 = vadd.f32 %v2630_v54, %v2629_v53 }
0x108c   :  { %v2639_v44 = vrot.slane %v2638_v60, 2 }
0x108d   :  { %v2632_v46 = vrot.slane %v2631_v0, 2 }
0x108e   :  { %v2640_v58 = vadd.f32 %v2639_v44, %v2638_v60 }
0x108f   :  { %v2633_v63 = vadd.f32 %v2632_v46, %v2631_v0 }
0x1090   :  { %v2641_v59 = vrot.slane %v2640_v58, 1 }
0x1091   :  { %v2634_v61 = vrot.slane %v2633_v63, 1 }
0x1092   :  { %v2642_v1 = vadd.f32 %v2641_v59, %v2640_v58 }
0x1093   :  { %v2635_v2 = vadd.f32 %v2634_v61, %v2633_v63 }
0x1094   :  { %3873 = vtanh.f32 %v2642_v1 }
0x1095   :  { %3875 = vtanh.f32 %v2635_v2 }
0x109e   :  { %v3874_v57 = vpop.eup %3873 }
0x109f   :  { %v3876_v56 = vpop.eup %3875 }
0x10a0   :  { %v4597_v4 = vsel %vm2663_vm9, %v3874_v57, %v3876_v56 }
0x10a1   :  { %3566 = vmatmul.mubr.msk.f32.vlgmr.msra.gmra.mrb[28].mxu1 %vm1901_vm7, %v4597_v4  ;;  %3023 = vst.msk [vmem:[#allocation10] sm:$0x3] %vm3018_vm3, %v4597_v4 }
0x10a2   :  { %3738 = vmatpush3.bf16.msra.mxu1 %v4509_v34  ;;  %3603 = vmatprep.mubr.msk.f32.mxu1 %vm4041_vm0, %v4042_v7 }
0x10a3   :  { %3739 = vmatprep.subr.bf16.mxu1 %v4040_v3 }
0x10a6   :  { %3741 = vmatpush3.bf16.msra.mxu1 %v4513_v13 }
0x10a7   :  { %3742 = vmatprep.subr.bf16.mxu1 %v4040_v3 }
0x10aa   :  { %3744 = vmatpush3.bf16.msra.mxu1 %v4519_v16 }
0x10ab   :  { %3745 = vmatprep.subr.bf16.mxu1 %v4040_v3 }
0x10ae   :  { %3747 = vmatpush3.bf16.msra.mxu1 %v4525_v19 }
0x10b1   :  { %3604 = vmatmul.mubr.msk.f32.vlgmr.msra.gmra.mrb[30].mxu1 %vm1901_vm7, %v4266_v36 }
0x1174   :  { %v2820_v6 = vpop.f32.mrb[28].mxu1 }
0x1175   :  { %v2821_v34 = vadd.f32 %v4581_v51, %v2820_v6  ;;  %v3567_v8 = vpop.f32.mrb[29].mxu1 }
0x1177   :  { %3877 = vtanh.f32 %v2821_v34 }
0x1181   :  { %v3878_v7 = vpop.eup %3877 }
0x1182   :  { %v2825_v9 = vmul.f32 %v3878_v7, %v4585_v55 }
0x1184   :  { %v2976_v13 = vpop.f32.mrb[30].mxu1  ;;  %v2826_v10 = vsel %vm2745_vm10, %v2825_v9, 0.0 }
0x1185   :  { %v2977_v16 = vadd.f32 %v4581_v51, %v2976_v13  ;;  %v3605_v32 = vpop.f32.mrb[31].mxu1  ;;  %2827 = vadd.xlane.f32.xlu1 %v2826_v10 }
0x1187   :  { %3879 = vtanh.f32 %v2977_v16 }
0x1191   :  { %v3880_v3 = vpop.eup %3879 }
0x1192   :  { %v2981_v19 = vmul.f32 %v3880_v3, %v4585_v55 }
0x1194   :  { %v2982_v33 = vsel %vm2745_vm10, %v2981_v19, 0.0 }
0x1195   :  { %2983 = vadd.xlane.f32.xlu1 %v2982_v33 }
0x1196   :  { %3904 = shalt.err (!%p3901_p4)
}
0x1197   :  { %s3905_s15 = scalar_lea.hbm %s4202_s30, 32 }
0x1198   :  { %p3906_p5 = scmp.ne.s32.totalorder %s4202_s30, %s3905_s15  ;;  %p3909_p6 = scmp.lt.u32.totalorder %s3905_s15, %s4202_s30 }
0x119a   :  { %p3911_p7 = pnand %p3909_p6, %p3906_p5 }
0x119c   :  { %3914 = shalt.err (!%p3911_p7)
}
0x119d   :  { %3043 = dma.vmem_to_hbm [thread:$0]  %s3041_s2, 32, %s4202_s30, [#allocation6]  }
0x119e   :  { %s3915_s16 = scalar_lea.vmem %s3061_s10, 32  ;;  %p3920_p9 = scmp.lt.s32.totalorder %s3061_s10, %s3061_s10 }
0x119f   :  { %p3916_p8 = scmp.ne.s32.totalorder %s3061_s10, %s3915_s16  ;;  %p3921_p10 = scmp.lt.s32.totalorder %s3915_s16, %s3915_s16 }
0x11a1   :  { %p3922_p11 = por %p3921_p10, %p3920_p9 }
0x11a3   :  { %p3923_p12 = pnand %p3922_p11, %p3916_p8 }
0x11a5   :  { %3926 = shalt.err (!%p3923_p12)
}
0x11a6   :  { %s3927_s18 = scalar_lea.hbm %s4212_s12, 32 }
0x11a7   :  { %p3928_p13 = scmp.ne.s32.totalorder %s4212_s12, %s3927_s18  ;;  %p3931_p0 = scmp.lt.u32.totalorder %s3927_s18, %s4212_s12 }
0x11a9   :  { %p3933_p1 = pnand %p3931_p0, %p3928_p13 }
0x11ab   :  { %3936 = shalt.err (!%p3933_p1)
}
0x11ac   :  { %3063 = dma.vmem_to_hbm [thread:$0]  %s3061_s10, 32, %s4212_s12, [#allocation9]  }
0x11ad   :  { %s4051_s0 = smov [#allocation7]  }
0x11ae   :  { %s3050_s5 = sshll.u32 %s4051_s0, 4  ;;  %s3051_s5 = int_to_ptr.vmem [resolvable:$true] %s3050_s5 }
0x11af   :  { %s3937_s30 = scalar_lea.vmem %s3051_s5, 32  ;;  %p3942_p3 = scmp.lt.s32.totalorder %s3051_s5, %s3051_s5 }
0x11b0   :  { %p3938_p2 = scmp.ne.s32.totalorder %s3051_s5, %s3937_s30  ;;  %p3943_p4 = scmp.lt.s32.totalorder %s3937_s30, %s3937_s30 }
0x11b2   :  { %p3944_p5 = por %p3943_p4, %p3942_p3 }
0x11b4   :  { %p3945_p6 = pnand %p3944_p5, %p3938_p2 }
0x11b6   :  { %3948 = shalt.err (!%p3945_p6)
}
0x11b7   :  { %s3949_s9 = scalar_lea.hbm %s4207_s24, 32 }
0x11b8   :  { %p3950_p7 = scmp.ne.s32.totalorder %s4207_s24, %s3949_s9  ;;  %p3953_p8 = scmp.lt.u32.totalorder %s3949_s9, %s4207_s24 }
0x11ba   :  { %p3955_p9 = pnand %p3953_p8, %p3950_p7 }
0x11bc   :  { %3958 = shalt.err (!%p3955_p9)
}
0x11bd   :  { %3053 = dma.vmem_to_hbm [thread:$0]  %s3051_s5, 32, %s4207_s24, [#allocation6]  }
0x11be   :  { %s4052_s12 = smov [#allocation10]  }
0x11bf   :  { %s3070_s13 = sshll.u32 %s4052_s12, 4  ;;  %s3071_s13 = int_to_ptr.vmem [resolvable:$true] %s3070_s13 }
0x11c0   :  { %s3959_s21 = scalar_lea.vmem %s3071_s13, 32  ;;  %p3964_p11 = scmp.lt.s32.totalorder %s3071_s13, %s3071_s13 }
0x11c1   :  { %p3960_p10 = scmp.ne.s32.totalorder %s3071_s13, %s3959_s21  ;;  %p3965_p12 = scmp.lt.s32.totalorder %s3959_s21, %s3959_s21 }
0x11c3   :  { %p3966_p13 = por %p3965_p12, %p3964_p11 }
0x11c5   :  { %p3967_p0 = pnand %p3966_p13, %p3960_p10 }
0x11c7   :  { %3970 = shalt.err (!%p3967_p0)
}
0x11c8   :  { %s3971_s25 = scalar_lea.hbm %s4217_s20, 32 }
0x11c9   :  { %p3972_p1 = scmp.ne.s32.totalorder %s4217_s20, %s3971_s25  ;;  %p3975_p2 = scmp.lt.u32.totalorder %s3971_s25, %s4217_s20 }
0x11cb   :  { %p3977_p3 = pnand %p3975_p2, %p3972_p1 }
0x11cd   :  { %3980 = shalt.err (!%p3977_p3)
}
0x11ce   :  { %3073 = dma.vmem_to_hbm [thread:$0]  %s3071_s13, 32, %s4217_s20, [#allocation9]   ;;  %v2748_v51 = vpop.xlane.xlu0 %2747 }
0x11cf   :  { %s4053_s24 = smov [#allocation3]  }
0x11d0   :  { %s3030_s20 = sshll.u32 %s4053_s24, 4  ;;  %s3031_s20 = int_to_ptr.vmem [resolvable:$true] %s3030_s20 }
0x11d1   :  { %s3981_s17 = scalar_lea.vmem %s3031_s20, 32  ;;  %p3986_p5 = scmp.lt.s32.totalorder %s3031_s20, %s3031_s20 }
0x11d2   :  { %v2906_v12 = vpop.xlane.xlu0 %2905  ;;  %p3982_p4 = scmp.ne.s32.totalorder %s3031_s20, %s3981_s17  ;;  %p3987_p6 = scmp.lt.s32.totalorder %s3981_s17, %s3981_s17 }
0x11d4   :  { %p3988_p7 = por %p3987_p6, %p3986_p5 }
0x11d6   :  { %p3989_p8 = pnand %p3988_p7, %p3982_p4 }
0x1212   :  { %v2828_v55 = vpop.xlane.xlu1 %2827 }
0x1213   :  { %v2985_v15 = vmax.f32 %v2748_v51, %v2828_v55 }
0x1222   :  { %v2984_v14 = vpop.xlane.xlu1 %2983 }
0x1223   :  { %v2986_v17 = vmax.f32 %v2906_v12, %v2984_v14 }
0x1225   :  { %v2987_v18 = vmax.f32 %v2985_v15, %v2986_v17 }
0x1227   :  { %v2988_v20 = vsub.f32 %v2748_v51, %v2987_v18  ;;  %v2991_v35 = vsub.f32 %v2828_v55, %v2987_v18  ;;  %v2994_v21 = vsub.f32 %v2906_v12, %v2987_v18  ;;  %v2997_v22 = vsub.f32 %v2984_v14, %v2987_v18 }
0x1229   :  { %v2989_v23 = vmul.f32 1.442695, %v2988_v20  ;;  %v2992_v24 = vmul.f32 1.442695, %v2991_v35  ;;  %v2995_v25 = vmul.f32 1.442695, %v2994_v21 }
0x122a   :  { %v2998_v26 = vmul.f32 1.442695, %v2997_v22 }
0x122b   :  { %3881 = vpow2.f32 %v2989_v23 }
0x122c   :  { %3883 = vpow2.f32 %v2992_v24 }
0x122d   :  { %3885 = vpow2.f32 %v2995_v25 }
0x122e   :  { %3887 = vpow2.f32 %v2998_v26 }
0x1235   :  { %v3882_v27 = vpop.eup %3881 }
0x1236   :  { %v3884_v28 = vpop.eup %3883 }
0x1237   :  { %v3000_v29 = vadd.f32 %v3884_v28, %v3882_v27  ;;  %v3886_v30 = vpop.eup %3885 }
0x1238   :  { %v3888_v11 = vpop.eup %3887 }
0x1239   :  { %v3001_v5 = vadd.f32 %v3886_v30, %v3000_v29 }
0x123b   :  { %v3002_v38 = vadd.f32 %v3888_v11, %v3001_v5 }
0x123d   :  { %3889 = vrcp.f32 %v3002_v38 }
0x1247   :  { %v3890_v39 = vpop.eup %3889 }
0x1248   :  { %v3004_v40 = vmul.f32 %v3890_v39, %v3882_v27  ;;  %v3007_v41 = vmul.f32 %v3890_v39, %v3884_v28  ;;  %v3011_v42 = vmul.f32 %v3890_v39, %v3886_v30  ;;  %v3014_v43 = vmul.f32 %v3890_v39, %v3888_v11 }
0x124a   :  { %v3006_v45 = vmul.f32 %v3004_v40, %v4559_v31  ;;  %v3009_v47 = vmul.f32 %v3007_v41, %v4597_v4  ;;  %v3012_v48 = vmul.f32 %v4272_v37, %v3011_v42  ;;  %v3015_v50 = vmul.f32 %v4266_v36, %v3014_v43 }
0x124c   :  { %v3010_v62 = vadd.f32 %v3009_v47, %v3006_v45 }
0x124e   :  { %v3013_v49 = vadd.f32 %v3012_v48, %v3010_v62 }
0x1250   :  { %v3016_v52 = vadd.f32 %v3015_v50, %v3013_v49 }
0x1252   :  { %3891 = vtanh.f32 %v3016_v52 }
0x125c   :  { %v3892_v53 = vpop.eup %3891 }
0x125d   :  { %3019 = vst.msk [vmem:[#allocation3] sm:$0x3] %vm3018_vm3, %v3892_v53 }
0x125e   :  { %3992 = shalt.err (!%p3989_p8)
}
0x125f   :  { %s4677_s29 = sld [smem:[#allocation27_spill]] }
0x1265   :  { %s3993_s3 = scalar_lea.hbm %s4677_s29, 32 }
0x1266   :  { %p3994_p9 = scmp.ne.s32.totalorder %s4677_s29, %s3993_s3  ;;  %p3997_p10 = scmp.lt.u32.totalorder %s3993_s3, %s4677_s29 }
0x1268   :  { %p3999_p11 = pnand %p3997_p10, %p3994_p9 }
0x126a   :  { %4002 = shalt.err (!%p3999_p11)
}
0x126b   :  { %3033 = dma.vmem_to_hbm [thread:$0]  %s3031_s20, 32, %s4677_s29, [#allocation4]  }
0x126c   :  { %4003 = dma.done.wait [#allocation4], 32  }
0x126d   :  { %4004 = vsyncadd [#allocation4], 4294967264 }
0x126e   :  { %4005 = dma.done.wait [#allocation6], 64  }
0x126f   :  { %4006 = vsyncadd [#allocation6], 4294967232 }
0x1270   :  { %4007 = dma.done.wait [#allocation9], 64  }
0x1271   :  { %4008 = vsyncadd [#allocation9], 4294967232 }
0x1272   :  { %3089 = vsyncpa [#allocation4], 1 }
0x1273   :  { %3090 = vsyncpa [#allocation6], 1 }
0x1274   :  { %3091 = vsyncpa [#allocation9], 1 }

</bundles_post_ra>
